<compile_context>
chip_gen: v7x
topology: tpu7x:2x2x1
jax: 0.10.0
libtpu: 0.0.40
codegen_flags: <defaults>
</compile_context>

<pallas_src>
import functools

import jax
import jax.numpy as jnp
from jax.experimental import pallas as pl
from jax.experimental.pallas import tpu as pltpu


# ----------------------------------------------------------------------------
# Pallas kernels
# ----------------------------------------------------------------------------
def _dense_kernel(x_ref, w_ref, b_ref, o_ref, *, relu, l2norm):
    # bf16 MXU operands, f32 accumulation.
    x = x_ref[...].astype(jnp.bfloat16)
    w = w_ref[...]  # already bf16
    y = jnp.dot(x, w, preferred_element_type=jnp.float32)
    y = y + b_ref[...]
    if relu:
        y = jnp.maximum(y, 0.0)
    if l2norm:
        s = jnp.sum(y * y, axis=-1, keepdims=True)
        y = y * jax.lax.rsqrt(jnp.maximum(s, 1e-24))
    o_ref[...] = y.astype(o_ref.dtype)


def _l2norm_kernel(x_ref, o_ref):
    x = x_ref[...].astype(jnp.float32)
    s = jnp.sum(x * x, axis=-1, keepdims=True)
    o_ref[...] = (x * jax.lax.rsqrt(jnp.maximum(s, 1e-24))).astype(o_ref.dtype)


def _logits_kernel(q_ref, k_ref, neg_ref, pos_ref, negl_ref, *, inv_t):
    j = pl.program_id(1)

    # Positive logit (f32) only once per row-tile, on the first K-tile.
    @pl.when(j == 0)
    def _():
        q32 = q_ref[...].astype(jnp.float32)
        k32 = k_ref[...].astype(jnp.float32)
        pos_ref[...] = jnp.sum(q32 * k32, axis=-1, keepdims=True) * inv_t

    # Negative logits: bf16 MXU matmul, f32 accumulation, lane-dense output.
    qb = q_ref[...].astype(jnp.bfloat16)
    nb = neg_ref[...].astype(jnp.bfloat16)
    negl_ref[...] = jnp.dot(qb, nb, preferred_element_type=jnp.float32) * inv_t


def _roi_pool_kernel(bidx_ref, f_ref, w_ref, a_ref, o_ref):
    # One ROI per grid step; feat block gathered by the index_map via scalar
    # prefetch (bidx).  MXU contraction over the spatial axis, L2-norm fused.
    del bidx_ref
    f = f_ref[0].astype(jnp.float32)          # (L, C)
    w = w_ref[0].astype(jnp.float32)          # (1, L)
    inv_a = a_ref[0]                          # (1, 1)
    pooled = jnp.dot(w, f, preferred_element_type=jnp.float32) * inv_a   # (1, C)
    s = jnp.sum(pooled * pooled, axis=-1, keepdims=True)
    o_ref[0] = pooled * jax.lax.rsqrt(jnp.maximum(s, 1e-24))


# ----------------------------------------------------------------------------
# pallas_call wrappers
# ----------------------------------------------------------------------------
def pallas_dense(x, w, b, *, relu, l2norm=False, tm=256):
    """y = relu?(x @ w + b) [optionally L2-normalized per row]; rows tiled."""
    M, K = x.shape
    N = w.shape[1]
    if M > tm:
        grid_m, tm_eff = pl.cdiv(M, tm), tm
        Mp = grid_m * tm
        if Mp != M:
            x = jnp.pad(x, ((0, Mp - M), (0, 0)))
    else:
        grid_m, tm_eff, Mp = 1, M, M

    w_bf = w.astype(jnp.bfloat16)
    b2 = b.reshape(1, N).astype(jnp.float32)
    kern = functools.partial(_dense_kernel, relu=relu, l2norm=l2norm)
    y = pl.pallas_call(
        kern,
        out_shape=jax.ShapeDtypeStruct((Mp, N), jnp.float32),
        grid=(grid_m,),
        in_specs=[pl.BlockSpec((tm_eff, K), lambda i: (i, 0)),
                  pl.BlockSpec((K, N), lambda i: (0, 0)),
                  pl.BlockSpec((1, N), lambda i: (0, 0))],
        out_specs=pl.BlockSpec((tm_eff, N), lambda i: (i, 0)),
        compiler_params=pltpu.CompilerParams(dimension_semantics=("parallel",)),
    )(x, w_bf, b2)
    return y[:M]


def l2_normalize_rows(x, *, tm=512):
    M, C = x.shape
    if M > tm:
        grid_m, tm_eff = pl.cdiv(M, tm), tm
        Mp = grid_m * tm
        if Mp != M:
            x = jnp.pad(x, ((0, Mp - M), (0, 0)))
    else:
        grid_m, tm_eff, Mp = 1, M, M
    y = pl.pallas_call(
        _l2norm_kernel,
        out_shape=jax.ShapeDtypeStruct((Mp, C), jnp.float32),
        grid=(grid_m,),
        in_specs=[pl.BlockSpec((tm_eff, C), lambda i: (i, 0))],
        out_specs=pl.BlockSpec((tm_eff, C), lambda i: (i, 0)),
        compiler_params=pltpu.CompilerParams(dimension_semantics=("parallel",)),
    )(x)
    return y[:M]


def pallas_logits(q, k, neg, temperature, *, tm=256, tk=256):
    """cat([sum(q*k, -1, keepdims), q @ neg], 1) / T  (concat done in JAX)."""
    N, C = q.shape
    K = neg.shape[1]
    inv_t = float(1.0 / temperature)

    if N > tm:
        grid_m, tm_eff = pl.cdiv(N, tm), tm
        Np = grid_m * tm
        if Np != N:
            q = jnp.pad(q, ((0, Np - N), (0, 0)))
            k = jnp.pad(k, ((0, Np - N), (0, 0)))
    else:
        grid_m, tm_eff, Np = 1, N, N

    if K > tk:
        grid_k, tk_eff = pl.cdiv(K, tk), tk
        Kp = grid_k * tk
        if Kp != K:
            neg = jnp.pad(neg, ((0, 0), (0, Kp - K)))
    else:
        grid_k, tk_eff, Kp = 1, K, K

    neg_bf = neg.astype(jnp.bfloat16)   # halves queue DMA / VMEM footprint
    kern = functools.partial(_logits_kernel, inv_t=inv_t)
    pos, negl = pl.pallas_call(
        kern,
        out_shape=(jax.ShapeDtypeStruct((Np, 1), jnp.float32),
                   jax.ShapeDtypeStruct((Np, Kp), jnp.float32)),
        grid=(grid_m, grid_k),
        in_specs=[pl.BlockSpec((tm_eff, C), lambda i, j: (i, 0)),
                  pl.BlockSpec((tm_eff, C), lambda i, j: (i, 0)),
                  pl.BlockSpec((C, tk_eff), lambda i, j: (0, j))],
        out_specs=[pl.BlockSpec((tm_eff, 1), lambda i, j: (i, 0)),
                   pl.BlockSpec((tm_eff, tk_eff), lambda i, j: (i, j))],
        compiler_params=pltpu.CompilerParams(
            dimension_semantics=("parallel", "arbitrary")),
    )(q, k, neg_bf)
    return jnp.concatenate([pos[:N], negl[:N, :K]], axis=1)


def pallas_roi_reduce_norm(feat_nlc, bidx, w2d, inv_area):
    """Per-ROI weighted spatial reduction + L2 norm; ROI batch gather via
    scalar-prefetch index_map (no feat[bidx] materialization)."""
    B, L, C = feat_nlc.shape
    N = w2d.shape[0]
    w3 = w2d.reshape(N, 1, L).astype(jnp.float32)
    a3 = inv_area.reshape(N, 1, 1).astype(jnp.float32)
    bidx = bidx.astype(jnp.int32)

    grid_spec = pltpu.PrefetchScalarGridSpec(
        num_scalar_prefetch=1,
        grid=(N,),
        in_specs=[
            pl.BlockSpec((1, L, C), lambda n, bidx_ref: (bidx_ref[n], 0, 0)),
            pl.BlockSpec((1, 1, L), lambda n, bidx_ref: (n, 0, 0)),
            pl.BlockSpec((1, 1, 1), lambda n, bidx_ref: (n, 0, 0)),
        ],
        out_specs=pl.BlockSpec((1, 1, C), lambda n, bidx_ref: (n, 0, 0)),
    )
    out = pl.pallas_call(
        _roi_pool_kernel,
        out_shape=jax.ShapeDtypeStruct((N, 1, C), jnp.float32),
        grid_spec=grid_spec,
        compiler_params=pltpu.CompilerParams(dimension_semantics=("arbitrary",)),
    )(bidx, feat_nlc, w3, a3)
    return out.reshape(N, C)


# ----------------------------------------------------------------------------
# Plain-JAX glue (channel-last)
# ----------------------------------------------------------------------------
def avg_pool_nhwc(x, kernel, stride):
    out = jax.lax.reduce_window(
        x, 0.0, jax.lax.add,
        window_dimensions=(1, kernel, kernel, 1),
        window_strides=(1, stride, stride, 1),
        padding="VALID")
    return out / float(kernel * kernel)


def conv1x1_small_k(x_nhwc, w, b, *, relu):
    # K=3 contraction: leave it to XLA/VPU; MXU would be ~97% padding.
    y = jnp.einsum('bhwc,cd->bhwd', x_nhwc, w) + b.reshape(1, 1, 1, -1)
    if relu:
        y = jnp.maximum(y, 0.0)
    return y


def conv1x1_nhwc(x_nhwc, w, b, *, relu):
    B, H, W, C = x_nhwc.shape
    rows = x_nhwc.reshape(B * H * W, C)
    y = pallas_dense(rows, w, b, relu=relu)
    return y.reshape(B, H, W, w.shape[1])


def encoder_forward(params, im_nchw):
    """Synthetic FPN-like encoder: returns (normalize(q), p4, p3) in NHWC."""
    x = jnp.transpose(im_nchw, (0, 2, 3, 1))                     # NHWC once
    x3 = avg_pool_nhwc(x, 8, 8)                                  # (B, H/8, W/8, 3)
    p3 = conv1x1_small_k(x3, params["w1"], params["b1"], relu=True)
    x4 = avg_pool_nhwc(p3, 2, 2)
    p4 = conv1x1_nhwc(x4, params["w2"], params["b2"], relu=True)
    g = jnp.mean(p4, axis=(1, 2))                                # (B, 256)
    # fc fused with the L2 normalize that always follows it in forward()
    q = pallas_dense(g, params["wfc"], params["bfc"], relu=False, l2norm=True)
    return q, p4, p3


# --- Precise ROI pooling (PrRoIPool2D, 1x1 output) --------------------------
def _hat_cdf(u):
    u = jnp.clip(u, -1.0, 1.0)
    return jnp.where(u <= 0.0, 0.5 * (u + 1.0) ** 2, 1.0 - 0.5 * (1.0 - u) ** 2)


def _hat_weights(lo, hi, size):
    idx = jnp.arange(size, dtype=jnp.float32)
    return _hat_cdf(hi[:, None] - idx[None, :]) - _hat_cdf(lo[:, None] - idx[None, :])


def prroi_pool_1x1_norm(feat_nhwc, rois, spatial_scale):
    """feat: (B, H, W, C); rois: (N, 5) [b, x1, y1, x2, y2] -> L2-normed (N, C)."""
    B, H, W, C = feat_nhwc.shape
    bidx = rois[:, 0].astype(jnp.int32)
    x1 = rois[:, 1] * spatial_scale
    y1 = rois[:, 2] * spatial_scale
    x2 = rois[:, 3] * spatial_scale
    y2 = rois[:, 4] * spatial_scale
    wx = _hat_weights(x1, x2, W)                       # (N, W)
    wy = _hat_weights(y1, y2, H)                       # (N, H)
    w2d = (wy[:, :, None] * wx[:, None, :]).reshape(rois.shape[0], H * W)
    area = (x2 - x1) * (y2 - y1)
    inv_area = jnp.where(area > 0.0, 1.0 / jnp.maximum(area, 1e-12), 0.0)
    feat_nlc = feat_nhwc.reshape(B, H * W, C)
    return pallas_roi_reduce_norm(feat_nlc, bidx, w2d, inv_area)


# ----------------------------------------------------------------------------
# CrossCL forward
# ----------------------------------------------------------------------------
def crosscl_forward(params_q, params_k, queue, queue_ptr,
                    im_q, im_k, ac_q, ac_k, shuffle_key, m, T):
    B = im_q.shape[0]
    R = ac_q.shape[1]
    NR = B * R
    img_size = im_q.shape[-1]
    K_queue = queue.shape[1]
    assert K_queue % B == 0, "MoCo requires K % batch_size == 0 (queue wrap)"

    batch_idx = jnp.broadcast_to(
        jnp.arange(B, dtype=ac_q.dtype)[:, None, None], (B, R, 1))

    # query branch (q is already L2-normalized: fused in the fc kernel)
    q, p4_q, p3_q = encoder_forward(params_q, im_q)

    # key branch (no-grad semantics): momentum update + batch shuffle
    # TODO(synk): all_gather/broadcast are identity (world_size == 1).
    params_k = jax.tree_util.tree_map(
        lambda pk, pq: m * pk + (1.0 - m) * pq, params_k, params_q)
    idx_shuffle = jax.random.permutation(shuffle_key, B)
    idx_unshuffle = jnp.argsort(idx_shuffle)
    k, p4_k, p3_k = encoder_forward(params_k, im_k[idx_shuffle])
    k = k[idx_unshuffle]
    p4_k = p4_k[idx_unshuffle]
    p3_k = p3_k[idx_unshuffle]

    # region negatives (avg_pool2d + channel normalize + flatten to (256, -1))
    if img_size == 224:
        pk_, ps_ = 3, 1
    elif img_size == 384:
        pk_, ps_ = 4, 2
    else:
        pk_, ps_ = 5, 2
    neg_p4_rows = l2_normalize_rows(avg_pool_nhwc(p4_k, pk_, ps_).reshape(-1, 256))
    neg_p4 = neg_p4_rows.T                                    # (256, B*h'*w')
    neg_p3_rows = l2_normalize_rows(avg_pool_nhwc(p3_k, pk_, ps_).reshape(-1, 256))
    neg_p3 = neg_p3_rows.T

    # ROIs (PrROI pool + fused L2 normalize)
    rois_q = jnp.concatenate([batch_idx, ac_q], axis=2).reshape(-1, 5)
    rois_k = jnp.concatenate([batch_idx, ac_k], axis=2).reshape(-1, 5)
    p4_q_roi = prroi_pool_1x1_norm(p4_q, rois_q, 1.0 / 16.0)
    p3_q_roi = prroi_pool_1x1_norm(p3_q, rois_q, 1.0 / 8.0)
    pos_p4 = prroi_pool_1x1_norm(p4_k, rois_k, 1.0 / 16.0)
    pos_p3 = prroi_pool_1x1_norm(p3_k, rois_k, 1.0 / 8.0)

    # contrastive logits (hot path, Pallas)
    logits_global = pallas_logits(q, k, queue, T)
    labels = jnp.zeros((logits_global.shape[0],), dtype=jnp.int32)

    # batch the 4 region logits into 2 calls (shared negatives matrices)
    q_region = jnp.concatenate([p4_q_roi, p3_q_roi], axis=0)     # (2*NR, 256)
    vs_p4 = pallas_logits(q_region,
                          jnp.concatenate([pos_p4, pos_p4], axis=0), neg_p4, T)
    vs_p3 = pallas_logits(q_region,
                          jnp.concatenate([pos_p3, pos_p3], axis=0), neg_p3, T)
    logits_p4, logits_p3_p4 = vs_p4[:NR], vs_p4[NR:]
    logits_p4_p3, logits_p3 = vs_p3[:NR], vs_p3[NR:]

    # dequeue & enqueue (functional state update; K % B == 0 -> no wrap clamp)
    ptr = queue_ptr[0]
    new_queue = jax.lax.dynamic_update_slice(queue, k.T, (jnp.int32(0), ptr))
    new_ptr = jnp.array([(ptr + B) % K_queue], dtype=queue_ptr.dtype)

    out = ((logits_global, labels), logits_p4, logits_p3, logits_p4_p3, logits_p3_p4)
    new_state = (params_k, new_queue, new_ptr)
    return out, new_state


# ----------------------------------------------------------------------------
# Main
# ----------------------------------------------------------------------------
if __name__ == "__main__":
    key = jax.random.PRNGKey(0)
    B, R, H = 2, 4, 96           # small image -> "else" avg_pool branch (5, stride 2)
    DIM, K, M, T = 128, 512, 0.999, 0.07
    keys = jax.random.split(key, 10)

    params_q = {
        "w1": 0.1 * jax.random.normal(keys[0], (3, 256), jnp.float32),
        "b1": jnp.zeros((1, 256), jnp.float32),
        "w2": 0.05 * jax.random.normal(keys[1], (256, 256), jnp.float32),
        "b2": jnp.zeros((1, 256), jnp.float32),
        "wfc": 0.05 * jax.random.normal(keys[2], (256, DIM), jnp.float32),
        "bfc": jnp.zeros((1, DIM), jnp.float32),
    }
    # key encoder initialized as a copy of the query encoder (as in __init__)
    params_k = jax.tree_util.tree_map(lambda p: p, params_q)

    queue = jax.random.normal(keys[3], (DIM, K), jnp.float32)
    queue = queue / jnp.maximum(jnp.linalg.norm(queue, axis=0, keepdims=True), 1e-12)
    queue_ptr = jnp.zeros((1,), jnp.int32)

    im_q = jax.random.normal(keys[4], (B, 3, H, H), jnp.float32)
    im_k = jax.random.normal(keys[5], (B, 3, H, H), jnp.float32)

    # deterministic ROI boxes [x1, y1, x2, y2] in image coordinates
    x1 = jax.random.uniform(keys[6], (B, R), minval=0.0, maxval=40.0)
    y1 = jax.random.uniform(keys[7], (B, R), minval=0.0, maxval=40.0)
    bw = jax.random.uniform(keys[8], (B, R), minval=16.0, maxval=48.0)
    bh = jax.random.uniform(keys[9], (B, R), minval=16.0, maxval=48.0)
    ac_q = jnp.stack([x1, y1, x1 + bw, y1 + bh], axis=-1)
    ac_k = jnp.stack([x1 + 2.0, y1 + 2.0, x1 + bw + 2.0, y1 + bh + 2.0], axis=-1)

    shuffle_key = jax.random.PRNGKey(42)

    fwd = jax.jit(crosscl_forward, static_argnums=(9, 10))
    out, state = fwd(params_q, params_k, queue, queue_ptr,
                     im_q, im_k, ac_q, ac_k, shuffle_key, M, T)
    jax.block_until_ready((out, state))

    (lg, labels), lp4, lp3, lp4p3, lp3p4 = out
    assert lg.shape == (B, 1 + K)
    assert labels.shape == (B,)
    assert lp4.shape == (B * R, 1 + B * 1 * 1)
    assert lp3.shape == (B * R, 1 + B * 4 * 4)
    assert lp4p3.shape == lp3.shape and lp3p4.shape == lp4.shape
    print("KERNEL_OK")
</pallas_src>

<mosaic_0001>
module attributes {stable_mosaic.version = 11 : i64} {
  func.func @_roi_pool_kernel(%arg0: i32, %arg1: memref<8xi32, #tpu.memory_space<smem>>, %arg2: memref<1x144x256xf32, #tpu.memory_space<vmem>>, %arg3: memref<1x1x144xf32, #tpu.memory_space<vmem>>, %arg4: memref<1x1x1xf32, #tpu.memory_space<vmem>>, %arg5: memref<1x1x256xf32, #tpu.memory_space<vmem>>) attributes {dimension_semantics = [#tpu.dimension_semantics<arbitrary>], iteration_bounds = array<i64: 8>, scalar_prefetch = 1 : i64, scratch_operands = 0 : i64, tpu.core_type = #tpu.core_type<tc>, window_params = [{transform_indices = @transform_0, window_bounds = array<i64: 1, 144, 256>}, {transform_indices = @transform_1, window_bounds = array<i64: 1, 1, 144>}, {transform_indices = @transform_2, window_bounds = array<i64: 1, 1, 1>}, {transform_indices = @transform_3, window_bounds = array<i64: 1, 1, 256>}]} {
    %c0 = arith.constant 0 : index
    %c0_0 = arith.constant 0 : index
    %c0_1 = arith.constant 0 : index
    %0 = vector.load %arg2[%c0, %c0_0, %c0_1] : memref<1x144x256xf32, #tpu.memory_space<vmem>>, vector<1x144x256xf32>
    %1 = vector.shape_cast %0 : vector<1x144x256xf32> to vector<144x256xf32>
    %c0_2 = arith.constant 0 : index
    %c0_3 = arith.constant 0 : index
    %c0_4 = arith.constant 0 : index
    %2 = vector.load %arg3[%c0_2, %c0_3, %c0_4] : memref<1x1x144xf32, #tpu.memory_space<vmem>>, vector<1x1x144xf32>
    %3 = vector.shape_cast %2 : vector<1x1x144xf32> to vector<1x144xf32>
    %c0_5 = arith.constant 0 : index
    %c0_6 = arith.constant 0 : index
    %c0_7 = arith.constant 0 : index
    %4 = vector.load %arg4[%c0_5, %c0_6, %c0_7] : memref<1x1x1xf32, #tpu.memory_space<vmem>>, vector<1x1x1xf32>
    %5 = vector.shape_cast %4 : vector<1x1x1xf32> to vector<1x1xf32>
    %cst = arith.constant dense<0.000000e+00> : vector<1x256xf32>
    %6 = tpu.matmul %3, %1, %cst {dimension_numbers = #tpu.dot_dimension_numbers<[1], [0], [0], [1], [0, 0, 1, 1], [], []>} : vector<1x144xf32>, vector<144x256xf32>, vector<1x256xf32> -> vector<1x256xf32>
    %7 = vector.broadcast %5 : vector<1x1xf32> to vector<1x256xf32>
    %8 = arith.mulf %6, %7 : vector<1x256xf32>
    %9 = arith.mulf %8, %8 : vector<1x256xf32>
    %cst_8 = arith.constant dense<0.000000e+00> : vector<1xf32>
    %10 = vector.multi_reduction <add>, %9, %cst_8 [1] : vector<1x256xf32> to vector<1xf32>
    %11 = vector.shape_cast %10 : vector<1xf32> to vector<1x1xf32>
    %cst_9 = arith.constant 1.000000e-24 : f32
    %12 = vector.broadcast %cst_9 : f32 to vector<1x1xf32>
    %13 = arith.maximumf %11, %12 : vector<1x1xf32>
    %14 = math.rsqrt %13 : vector<1x1xf32>
    %15 = vector.broadcast %14 : vector<1x1xf32> to vector<1x256xf32>
    %16 = arith.mulf %8, %15 : vector<1x256xf32>
    %c0_10 = arith.constant 0 : index
    %c0_11 = arith.constant 0 : index
    %c0_12 = arith.constant 0 : index
    %17 = vector.load %arg5[%c0_10, %c0_11, %c0_12] : memref<1x1x256xf32, #tpu.memory_space<vmem>>, vector<1x1x256xf32>
    %18 = vector.shape_cast %17 : vector<1x1x256xf32> to vector<1x256xf32>
    %19 = vector.shape_cast %16 : vector<1x256xf32> to vector<1x1x256xf32>
    tpu.vector_store %arg5[%c0_10, %c0_11, %c0_12], %19 {strides = array<i32>} : memref<1x1x256xf32, #tpu.memory_space<vmem>>, vector<1x1x256xf32>,
    return
  }
  func.func @transform_0(%arg0: i32, %arg1: memref<8xi32, #tpu.memory_space<smem>>) -> (i32, i32, i32) {
    %0 = arith.index_cast %arg0 : i32 to index
    %1 = memref.load %arg1[%0] : memref<8xi32, #tpu.memory_space<smem>>
    %c0_i32 = arith.constant 0 : i32
    %c0_i32_0 = arith.constant 0 : i32
    %c0_i32_1 = arith.constant 0 : i32
    return %1, %c0_i32, %c0_i32_0 : i32, i32, i32
  }
  func.func @transform_1(%arg0: i32, %arg1: memref<8xi32, #tpu.memory_space<smem>>) -> (i32, i32, i32) {
    %c0_i32 = arith.constant 0 : i32
    %c0_i32_0 = arith.constant 0 : i32
    %c0_i32_1 = arith.constant 0 : i32
    return %arg0, %c0_i32, %c0_i32_0 : i32, i32, i32
  }
  func.func @transform_2(%arg0: i32, %arg1: memref<8xi32, #tpu.memory_space<smem>>) -> (i32, i32, i32) {
    %c0_i32 = arith.constant 0 : i32
    %c0_i32_0 = arith.constant 0 : i32
    %c0_i32_1 = arith.constant 0 : i32
    return %arg0, %c0_i32, %c0_i32_0 : i32, i32, i32
  }
  func.func @transform_3(%arg0: i32, %arg1: memref<8xi32, #tpu.memory_space<smem>>) -> (i32, i32, i32) {
    %c0_i32 = arith.constant 0 : i32
    %c0_i32_0 = arith.constant 0 : i32
    %c0_i32_1 = arith.constant 0 : i32
    return %arg0, %c0_i32, %c0_i32_0 : i32, i32, i32
  }
}

module attributes {stable_mosaic.version = 11 : i64} {
  func.func @_l2norm_kernel(%arg0: i32, %arg1: memref<32x256xf32, #tpu.memory_space<vmem>>, %arg2: memref<32x256xf32, #tpu.memory_space<vmem>>) attributes {dimension_semantics = [#tpu.dimension_semantics<parallel>], iteration_bounds = array<i64: 1>, scalar_prefetch = 0 : i64, scratch_operands = 0 : i64, tpu.core_type = #tpu.core_type<tc>, window_params = [{transform_indices = @transform_0, window_bounds = array<i64: 32, 256>}, {transform_indices = @transform_1, window_bounds = array<i64: 32, 256>}]} {
    %c0 = arith.constant 0 : index
    %c0_0 = arith.constant 0 : index
    %0 = vector.load %arg1[%c0, %c0_0] : memref<32x256xf32, #tpu.memory_space<vmem>>, vector<32x256xf32>
    %1 = arith.mulf %0, %0 : vector<32x256xf32>
    %cst = arith.constant dense<0.000000e+00> : vector<32xf32>
    %2 = vector.multi_reduction <add>, %1, %cst [1] : vector<32x256xf32> to vector<32xf32>
    %3 = vector.shape_cast %2 : vector<32xf32> to vector<32x1xf32>
    %cst_1 = arith.constant 1.000000e-24 : f32
    %4 = vector.broadcast %cst_1 : f32 to vector<32x1xf32>
    %5 = arith.maximumf %3, %4 : vector<32x1xf32>
    %6 = math.rsqrt %5 : vector<32x1xf32>
    %7 = vector.broadcast %6 : vector<32x1xf32> to vector<32x256xf32>
    %8 = arith.mulf %0, %7 : vector<32x256xf32>
    %c0_2 = arith.constant 0 : index
    %c0_3 = arith.constant 0 : index
    %9 = vector.load %arg2[%c0_2, %c0_3] : memref<32x256xf32, #tpu.memory_space<vmem>>, vector<32x256xf32>
    tpu.vector_store %arg2[%c0_2, %c0_3], %8 {strides = array<i32>} : memref<32x256xf32, #tpu.memory_space<vmem>>, vector<32x256xf32>,
    return
  }
  func.func @transform_0(%arg0: i32) -> (i32, i32) {
    %c0_i32 = arith.constant 0 : i32
    %c0_i32_0 = arith.constant 0 : i32
    return %arg0, %c0_i32 : i32, i32
  }
  func.func @transform_1(%arg0: i32) -> (i32, i32) {
    %c0_i32 = arith.constant 0 : i32
    %c0_i32_0 = arith.constant 0 : i32
    return %arg0, %c0_i32 : i32, i32
  }
}

module attributes {stable_mosaic.version = 11 : i64} {
  func.func @_dense_kernel(%arg0: i32, %arg1: memref<72x256xf32, #tpu.memory_space<vmem>>, %arg2: memref<256x256xbf16, #tpu.memory_space<vmem>>, %arg3: memref<1x256xf32, #tpu.memory_space<vmem>>, %arg4: memref<72x256xf32, #tpu.memory_space<vmem>>) attributes {dimension_semantics = [#tpu.dimension_semantics<parallel>], iteration_bounds = array<i64: 1>, scalar_prefetch = 0 : i64, scratch_operands = 0 : i64, tpu.core_type = #tpu.core_type<tc>, window_params = [{transform_indices = @transform_0, window_bounds = array<i64: 72, 256>}, {pipeline_mode = #tpu.pipeline_mode<synchronous>, transform_indices = @transform_1, window_bounds = array<i64: 256, 256>}, {pipeline_mode = #tpu.pipeline_mode<synchronous>, transform_indices = @transform_2, window_bounds = array<i64: 1, 256>}, {transform_indices = @transform_3, window_bounds = array<i64: 72, 256>}]} {
    %c0 = arith.constant 0 : index
    %c0_0 = arith.constant 0 : index
    %0 = vector.load %arg1[%c0, %c0_0] : memref<72x256xf32, #tpu.memory_space<vmem>>, vector<72x256xf32>
    %1 = arith.truncf %0 : vector<72x256xf32> to vector<72x256xbf16>
    %c0_1 = arith.constant 0 : index
    %c0_2 = arith.constant 0 : index
    %2 = vector.load %arg2[%c0_1, %c0_2] : memref<256x256xbf16, #tpu.memory_space<vmem>>, vector<256x256xbf16>
    %cst = arith.constant dense<0.000000e+00> : vector<72x256xf32>
    %3 = tpu.matmul %1, %2, %cst {dimension_numbers = #tpu.dot_dimension_numbers<[1], [0], [0], [1], [0, 0, 1, 1], [], []>} : vector<72x256xbf16>, vector<256x256xbf16>, vector<72x256xf32> -> vector<72x256xf32>
    %c0_3 = arith.constant 0 : index
    %c0_4 = arith.constant 0 : index
    %4 = vector.load %arg3[%c0_3, %c0_4] : memref<1x256xf32, #tpu.memory_space<vmem>>, vector<1x256xf32>
    %5 = vector.broadcast %4 : vector<1x256xf32> to vector<72x256xf32>
    %6 = arith.addf %3, %5 : vector<72x256xf32>
    %cst_5 = arith.constant 0.000000e+00 : f32
    %7 = vector.broadcast %cst_5 : f32 to vector<72x256xf32>
    %8 = arith.maximumf %6, %7 : vector<72x256xf32>
    %c0_6 = arith.constant 0 : index
    %c0_7 = arith.constant 0 : index
    %9 = vector.load %arg4[%c0_6, %c0_7] : memref<72x256xf32, #tpu.memory_space<vmem>>, vector<72x256xf32>
    tpu.vector_store %arg4[%c0_6, %c0_7], %8 {strides = array<i32>} : memref<72x256xf32, #tpu.memory_space<vmem>>, vector<72x256xf32>,
    return
  }
  func.func @transform_0(%arg0: i32) -> (i32, i32) {
    %c0_i32 = arith.constant 0 : i32
    %c0_i32_0 = arith.constant 0 : i32
    return %arg0, %c0_i32 : i32, i32
  }
  func.func @transform_1(%arg0: i32) -> (i32, i32) {
    %c0_i32 = arith.constant 0 : i32
    %c0_i32_0 = arith.constant 0 : i32
    %c0_i32_1 = arith.constant 0 : i32
    return %c0_i32, %c0_i32_0 : i32, i32
  }
  func.func @transform_2(%arg0: i32) -> (i32, i32) {
    %c0_i32 = arith.constant 0 : i32
    %c0_i32_0 = arith.constant 0 : i32
    %c0_i32_1 = arith.constant 0 : i32
    return %c0_i32, %c0_i32_0 : i32, i32
  }
  func.func @transform_3(%arg0: i32) -> (i32, i32) {
    %c0_i32 = arith.constant 0 : i32
    %c0_i32_0 = arith.constant 0 : i32
    return %arg0, %c0_i32 : i32, i32
  }
}

module attributes {stable_mosaic.version = 11 : i64} {
  func.func @_dense_kernel(%arg0: i32, %arg1: memref<2x256xf32, #tpu.memory_space<vmem>>, %arg2: memref<256x128xbf16, #tpu.memory_space<vmem>>, %arg3: memref<1x128xf32, #tpu.memory_space<vmem>>, %arg4: memref<2x128xf32, #tpu.memory_space<vmem>>) attributes {dimension_semantics = [#tpu.dimension_semantics<parallel>], iteration_bounds = array<i64: 1>, scalar_prefetch = 0 : i64, scratch_operands = 0 : i64, tpu.core_type = #tpu.core_type<tc>, window_params = [{transform_indices = @transform_0, window_bounds = array<i64: 2, 256>}, {pipeline_mode = #tpu.pipeline_mode<synchronous>, transform_indices = @transform_1, window_bounds = array<i64: 256, 128>}, {pipeline_mode = #tpu.pipeline_mode<synchronous>, transform_indices = @transform_2, window_bounds = array<i64: 1, 128>}, {transform_indices = @transform_3, window_bounds = array<i64: 2, 128>}]} {
    %c0 = arith.constant 0 : index
    %c0_0 = arith.constant 0 : index
    %0 = vector.load %arg1[%c0, %c0_0] : memref<2x256xf32, #tpu.memory_space<vmem>>, vector<2x256xf32>
    %1 = arith.truncf %0 : vector<2x256xf32> to vector<2x256xbf16>
    %c0_1 = arith.constant 0 : index
    %c0_2 = arith.constant 0 : index
    %2 = vector.load %arg2[%c0_1, %c0_2] : memref<256x128xbf16, #tpu.memory_space<vmem>>, vector<256x128xbf16>
    %cst = arith.constant dense<0.000000e+00> : vector<2x128xf32>
    %3 = tpu.matmul %1, %2, %cst {dimension_numbers = #tpu.dot_dimension_numbers<[1], [0], [0], [1], [0, 0, 1, 1], [], []>} : vector<2x256xbf16>, vector<256x128xbf16>, vector<2x128xf32> -> vector<2x128xf32>
    %c0_3 = arith.constant 0 : index
    %c0_4 = arith.constant 0 : index
    %4 = vector.load %arg3[%c0_3, %c0_4] : memref<1x128xf32, #tpu.memory_space<vmem>>, vector<1x128xf32>
    %5 = vector.broadcast %4 : vector<1x128xf32> to vector<2x128xf32>
    %6 = arith.addf %3, %5 : vector<2x128xf32>
    %7 = arith.mulf %6, %6 : vector<2x128xf32>
    %cst_5 = arith.constant dense<0.000000e+00> : vector<2xf32>
    %8 = vector.multi_reduction <add>, %7, %cst_5 [1] : vector<2x128xf32> to vector<2xf32>
    %9 = vector.shape_cast %8 : vector<2xf32> to vector<2x1xf32>
    %cst_6 = arith.constant 1.000000e-24 : f32
    %10 = vector.broadcast %cst_6 : f32 to vector<2x1xf32>
    %11 = arith.maximumf %9, %10 : vector<2x1xf32>
    %12 = math.rsqrt %11 : vector<2x1xf32>
    %13 = vector.broadcast %12 : vector<2x1xf32> to vector<2x128xf32>
    %14 = arith.mulf %6, %13 : vector<2x128xf32>
    %c0_7 = arith.constant 0 : index
    %c0_8 = arith.constant 0 : index
    %15 = vector.load %arg4[%c0_7, %c0_8] : memref<2x128xf32, #tpu.memory_space<vmem>>, vector<2x128xf32>
    tpu.vector_store %arg4[%c0_7, %c0_8], %14 {strides = array<i32>} : memref<2x128xf32, #tpu.memory_space<vmem>>, vector<2x128xf32>,
    return
  }
  func.func @transform_0(%arg0: i32) -> (i32, i32) {
    %c0_i32 = arith.constant 0 : i32
    %c0_i32_0 = arith.constant 0 : i32
    return %arg0, %c0_i32 : i32, i32
  }
  func.func @transform_1(%arg0: i32) -> (i32, i32) {
    %c0_i32 = arith.constant 0 : i32
    %c0_i32_0 = arith.constant 0 : i32
    %c0_i32_1 = arith.constant 0 : i32
    return %c0_i32, %c0_i32_0 : i32, i32
  }
  func.func @transform_2(%arg0: i32) -> (i32, i32) {
    %c0_i32 = arith.constant 0 : i32
    %c0_i32_0 = arith.constant 0 : i32
    %c0_i32_1 = arith.constant 0 : i32
    return %c0_i32, %c0_i32_0 : i32, i32
  }
  func.func @transform_3(%arg0: i32) -> (i32, i32) {
    %c0_i32 = arith.constant 0 : i32
    %c0_i32_0 = arith.constant 0 : i32
    return %arg0, %c0_i32 : i32, i32
  }
}

module attributes {stable_mosaic.version = 11 : i64} {
  func.func @_l2norm_kernel(%arg0: i32, %arg1: memref<2x256xf32, #tpu.memory_space<vmem>>, %arg2: memref<2x256xf32, #tpu.memory_space<vmem>>) attributes {dimension_semantics = [#tpu.dimension_semantics<parallel>], iteration_bounds = array<i64: 1>, scalar_prefetch = 0 : i64, scratch_operands = 0 : i64, tpu.core_type = #tpu.core_type<tc>, window_params = [{transform_indices = @transform_0, window_bounds = array<i64: 2, 256>}, {transform_indices = @transform_1, window_bounds = array<i64: 2, 256>}]} {
    %c0 = arith.constant 0 : index
    %c0_0 = arith.constant 0 : index
    %0 = vector.load %arg1[%c0, %c0_0] : memref<2x256xf32, #tpu.memory_space<vmem>>, vector<2x256xf32>
    %1 = arith.mulf %0, %0 : vector<2x256xf32>
    %cst = arith.constant dense<0.000000e+00> : vector<2xf32>
    %2 = vector.multi_reduction <add>, %1, %cst [1] : vector<2x256xf32> to vector<2xf32>
    %3 = vector.shape_cast %2 : vector<2xf32> to vector<2x1xf32>
    %cst_1 = arith.constant 1.000000e-24 : f32
    %4 = vector.broadcast %cst_1 : f32 to vector<2x1xf32>
    %5 = arith.maximumf %3, %4 : vector<2x1xf32>
    %6 = math.rsqrt %5 : vector<2x1xf32>
    %7 = vector.broadcast %6 : vector<2x1xf32> to vector<2x256xf32>
    %8 = arith.mulf %0, %7 : vector<2x256xf32>
    %c0_2 = arith.constant 0 : index
    %c0_3 = arith.constant 0 : index
    %9 = vector.load %arg2[%c0_2, %c0_3] : memref<2x256xf32, #tpu.memory_space<vmem>>, vector<2x256xf32>
    tpu.vector_store %arg2[%c0_2, %c0_3], %8 {strides = array<i32>} : memref<2x256xf32, #tpu.memory_space<vmem>>, vector<2x256xf32>,
    return
  }
  func.func @transform_0(%arg0: i32) -> (i32, i32) {
    %c0_i32 = arith.constant 0 : i32
    %c0_i32_0 = arith.constant 0 : i32
    return %arg0, %c0_i32 : i32, i32
  }
  func.func @transform_1(%arg0: i32) -> (i32, i32) {
    %c0_i32 = arith.constant 0 : i32
    %c0_i32_0 = arith.constant 0 : i32
    return %arg0, %c0_i32 : i32, i32
  }
}

module attributes {stable_mosaic.version = 11 : i64} {
  func.func @_roi_pool_kernel(%arg0: i32, %arg1: memref<8xi32, #tpu.memory_space<smem>>, %arg2: memref<1x36x256xf32, #tpu.memory_space<vmem>>, %arg3: memref<1x1x36xf32, #tpu.memory_space<vmem>>, %arg4: memref<1x1x1xf32, #tpu.memory_space<vmem>>, %arg5: memref<1x1x256xf32, #tpu.memory_space<vmem>>) attributes {dimension_semantics = [#tpu.dimension_semantics<arbitrary>], iteration_bounds = array<i64: 8>, scalar_prefetch = 1 : i64, scratch_operands = 0 : i64, tpu.core_type = #tpu.core_type<tc>, window_params = [{transform_indices = @transform_0, window_bounds = array<i64: 1, 36, 256>}, {transform_indices = @transform_1, window_bounds = array<i64: 1, 1, 36>}, {transform_indices = @transform_2, window_bounds = array<i64: 1, 1, 1>}, {transform_indices = @transform_3, window_bounds = array<i64: 1, 1, 256>}]} {
    %c0 = arith.constant 0 : index
    %c0_0 = arith.constant 0 : index
    %c0_1 = arith.constant 0 : index
    %0 = vector.load %arg2[%c0, %c0_0, %c0_1] : memref<1x36x256xf32, #tpu.memory_space<vmem>>, vector<1x36x256xf32>
    %1 = vector.shape_cast %0 : vector<1x36x256xf32> to vector<36x256xf32>
    %c0_2 = arith.constant 0 : index
    %c0_3 = arith.constant 0 : index
    %c0_4 = arith.constant 0 : index
    %2 = vector.load %arg3[%c0_2, %c0_3, %c0_4] : memref<1x1x36xf32, #tpu.memory_space<vmem>>, vector<1x1x36xf32>
    %3 = vector.shape_cast %2 : vector<1x1x36xf32> to vector<1x36xf32>
    %c0_5 = arith.constant 0 : index
    %c0_6 = arith.constant 0 : index
    %c0_7 = arith.constant 0 : index
    %4 = vector.load %arg4[%c0_5, %c0_6, %c0_7] : memref<1x1x1xf32, #tpu.memory_space<vmem>>, vector<1x1x1xf32>
    %5 = vector.shape_cast %4 : vector<1x1x1xf32> to vector<1x1xf32>
    %cst = arith.constant dense<0.000000e+00> : vector<1x256xf32>
    %6 = tpu.matmul %3, %1, %cst {dimension_numbers = #tpu.dot_dimension_numbers<[1], [0], [0], [1], [0, 0, 1, 1], [], []>} : vector<1x36xf32>, vector<36x256xf32>, vector<1x256xf32> -> vector<1x256xf32>
    %7 = vector.broadcast %5 : vector<1x1xf32> to vector<1x256xf32>
    %8 = arith.mulf %6, %7 : vector<1x256xf32>
    %9 = arith.mulf %8, %8 : vector<1x256xf32>
    %cst_8 = arith.constant dense<0.000000e+00> : vector<1xf32>
    %10 = vector.multi_reduction <add>, %9, %cst_8 [1] : vector<1x256xf32> to vector<1xf32>
    %11 = vector.shape_cast %10 : vector<1xf32> to vector<1x1xf32>
    %cst_9 = arith.constant 1.000000e-24 : f32
    %12 = vector.broadcast %cst_9 : f32 to vector<1x1xf32>
    %13 = arith.maximumf %11, %12 : vector<1x1xf32>
    %14 = math.rsqrt %13 : vector<1x1xf32>
    %15 = vector.broadcast %14 : vector<1x1xf32> to vector<1x256xf32>
    %16 = arith.mulf %8, %15 : vector<1x256xf32>
    %c0_10 = arith.constant 0 : index
    %c0_11 = arith.constant 0 : index
    %c0_12 = arith.constant 0 : index
    %17 = vector.load %arg5[%c0_10, %c0_11, %c0_12] : memref<1x1x256xf32, #tpu.memory_space<vmem>>, vector<1x1x256xf32>
    %18 = vector.shape_cast %17 : vector<1x1x256xf32> to vector<1x256xf32>
    %19 = vector.shape_cast %16 : vector<1x256xf32> to vector<1x1x256xf32>
    tpu.vector_store %arg5[%c0_10, %c0_11, %c0_12], %19 {strides = array<i32>} : memref<1x1x256xf32, #tpu.memory_space<vmem>>, vector<1x1x256xf32>,
    return
  }
  func.func @transform_0(%arg0: i32, %arg1: memref<8xi32, #tpu.memory_space<smem>>) -> (i32, i32, i32) {
    %0 = arith.index_cast %arg0 : i32 to index
    %1 = memref.load %arg1[%0] : memref<8xi32, #tpu.memory_space<smem>>
    %c0_i32 = arith.constant 0 : i32
    %c0_i32_0 = arith.constant 0 : i32
    %c0_i32_1 = arith.constant 0 : i32
    return %1, %c0_i32, %c0_i32_0 : i32, i32, i32
  }
  func.func @transform_1(%arg0: i32, %arg1: memref<8xi32, #tpu.memory_space<smem>>) -> (i32, i32, i32) {
    %c0_i32 = arith.constant 0 : i32
    %c0_i32_0 = arith.constant 0 : i32
    %c0_i32_1 = arith.constant 0 : i32
    return %arg0, %c0_i32, %c0_i32_0 : i32, i32, i32
  }
  func.func @transform_2(%arg0: i32, %arg1: memref<8xi32, #tpu.memory_space<smem>>) -> (i32, i32, i32) {
    %c0_i32 = arith.constant 0 : i32
    %c0_i32_0 = arith.constant 0 : i32
    %c0_i32_1 = arith.constant 0 : i32
    return %arg0, %c0_i32, %c0_i32_0 : i32, i32, i32
  }
  func.func @transform_3(%arg0: i32, %arg1: memref<8xi32, #tpu.memory_space<smem>>) -> (i32, i32, i32) {
    %c0_i32 = arith.constant 0 : i32
    %c0_i32_0 = arith.constant 0 : i32
    %c0_i32_1 = arith.constant 0 : i32
    return %arg0, %c0_i32, %c0_i32_0 : i32, i32, i32
  }
}

module attributes {stable_mosaic.version = 11 : i64} {
  func.func @_logits_kernel(%arg0: i32, %arg1: i32, %arg2: memref<16x256xf32, #tpu.memory_space<vmem>>, %arg3: memref<16x256xf32, #tpu.memory_space<vmem>>, %arg4: memref<256x2xbf16, #tpu.memory_space<vmem>>, %arg5: memref<16x1xf32, #tpu.memory_space<vmem>>, %arg6: memref<16x2xf32, #tpu.memory_space<vmem>>) attributes {dimension_semantics = [#tpu.dimension_semantics<parallel>, #tpu.dimension_semantics<arbitrary>], iteration_bounds = array<i64: 1, 1>, scalar_prefetch = 0 : i64, scratch_operands = 0 : i64, tpu.core_type = #tpu.core_type<tc>, window_params = [{transform_indices = @transform_0, window_bounds = array<i64: 16, 256>}, {transform_indices = @transform_1, window_bounds = array<i64: 16, 256>}, {transform_indices = @transform_2, window_bounds = array<i64: 256, 2>}, {transform_indices = @transform_3, window_bounds = array<i64: 16, 1>}, {transform_indices = @transform_4, window_bounds = array<i64: 16, 2>}]} {
    %c0_i32 = arith.constant 0 : i32
    %0 = arith.cmpi eq, %arg1, %c0_i32 : i32
    %1 = arith.extui %0 : i1 to i32
    %c0_i32_0 = arith.constant 0 : i32
    %2 = arith.cmpi ne, %1, %c0_i32_0 : i32
    scf.if %2 {
      %c0_7 = arith.constant 0 : index
      %c0_8 = arith.constant 0 : index
      %10 = vector.load %arg2[%c0_7, %c0_8] : memref<16x256xf32, #tpu.memory_space<vmem>>, vector<16x256xf32>
      %c0_9 = arith.constant 0 : index
      %c0_10 = arith.constant 0 : index
      %11 = vector.load %arg3[%c0_9, %c0_10] : memref<16x256xf32, #tpu.memory_space<vmem>>, vector<16x256xf32>
      %12 = arith.mulf %10, %11 : vector<16x256xf32>
      %cst_11 = arith.constant dense<0.000000e+00> : vector<16xf32>
      %13 = vector.multi_reduction <add>, %12, %cst_11 [1] : vector<16x256xf32> to vector<16xf32>
      %14 = vector.shape_cast %13 : vector<16xf32> to vector<16x1xf32>
      %cst_12 = arith.constant 14.2857141 : f32
      %15 = vector.broadcast %cst_12 : f32 to vector<16x1xf32>
      %16 = arith.mulf %14, %15 : vector<16x1xf32>
      %c0_13 = arith.constant 0 : index
      %c0_14 = arith.constant 0 : index
      %17 = vector.load %arg5[%c0_13, %c0_14] : memref<16x1xf32, #tpu.memory_space<vmem>>, vector<16x1xf32>
      tpu.vector_store %arg5[%c0_13, %c0_14], %16 {strides = array<i32>} : memref<16x1xf32, #tpu.memory_space<vmem>>, vector<16x1xf32>,
    } else {
    }
    %c0 = arith.constant 0 : index
    %c0_1 = arith.constant 0 : index
    %3 = vector.load %arg2[%c0, %c0_1] : memref<16x256xf32, #tpu.memory_space<vmem>>, vector<16x256xf32>
    %4 = arith.truncf %3 : vector<16x256xf32> to vector<16x256xbf16>
    %c0_2 = arith.constant 0 : index
    %c0_3 = arith.constant 0 : index
    %5 = vector.load %arg4[%c0_2, %c0_3] : memref<256x2xbf16, #tpu.memory_space<vmem>>, vector<256x2xbf16>
    %cst = arith.constant dense<0.000000e+00> : vector<16x2xf32>
    %6 = tpu.matmul %4, %5, %cst {dimension_numbers = #tpu.dot_dimension_numbers<[1], [0], [0], [1], [0, 0, 1, 1], [], []>} : vector<16x256xbf16>, vector<256x2xbf16>, vector<16x2xf32> -> vector<16x2xf32>
    %cst_4 = arith.constant 14.2857141 : f32
    %7 = vector.broadcast %cst_4 : f32 to vector<16x2xf32>
    %8 = arith.mulf %6, %7 : vector<16x2xf32>
    %c0_5 = arith.constant 0 : index
    %c0_6 = arith.constant 0 : index
    %9 = vector.load %arg6[%c0_5, %c0_6] : memref<16x2xf32, #tpu.memory_space<vmem>>, vector<16x2xf32>
    tpu.vector_store %arg6[%c0_5, %c0_6], %8 {strides = array<i32>} : memref<16x2xf32, #tpu.memory_space<vmem>>, vector<16x2xf32>,
    return
  }
  func.func @transform_0(%arg0: i32, %arg1: i32) -> (i32, i32) {
    %c0_i32 = arith.constant 0 : i32
    %c0_i32_0 = arith.constant 0 : i32
    return %arg0, %c0_i32 : i32, i32
  }
  func.func @transform_1(%arg0: i32, %arg1: i32) -> (i32, i32) {
    %c0_i32 = arith.constant 0 : i32
    %c0_i32_0 = arith.constant 0 : i32
    return %arg0, %c0_i32 : i32, i32
  }
  func.func @transform_2(%arg0: i32, %arg1: i32) -> (i32, i32) {
    %c0_i32 = arith.constant 0 : i32
    %c0_i32_0 = arith.constant 0 : i32
    return %c0_i32, %arg1 : i32, i32
  }
  func.func @transform_3(%arg0: i32, %arg1: i32) -> (i32, i32) {
    %c0_i32 = arith.constant 0 : i32
    %c0_i32_0 = arith.constant 0 : i32
    return %arg0, %c0_i32 : i32, i32
  }
  func.func @transform_4(%arg0: i32, %arg1: i32) -> (i32, i32) {
    %c0_i32 = arith.constant 0 : i32
    return %arg0, %arg1 : i32, i32
  }
}

module attributes {stable_mosaic.version = 11 : i64} {
  func.func @_logits_kernel(%arg0: i32, %arg1: i32, %arg2: memref<16x256xf32, #tpu.memory_space<vmem>>, %arg3: memref<16x256xf32, #tpu.memory_space<vmem>>, %arg4: memref<256x32xbf16, #tpu.memory_space<vmem>>, %arg5: memref<16x1xf32, #tpu.memory_space<vmem>>, %arg6: memref<16x32xf32, #tpu.memory_space<vmem>>) attributes {dimension_semantics = [#tpu.dimension_semantics<parallel>, #tpu.dimension_semantics<arbitrary>], iteration_bounds = array<i64: 1, 1>, scalar_prefetch = 0 : i64, scratch_operands = 0 : i64, tpu.core_type = #tpu.core_type<tc>, window_params = [{transform_indices = @transform_0, window_bounds = array<i64: 16, 256>}, {transform_indices = @transform_1, window_bounds = array<i64: 16, 256>}, {transform_indices = @transform_2, window_bounds = array<i64: 256, 32>}, {transform_indices = @transform_3, window_bounds = array<i64: 16, 1>}, {transform_indices = @transform_4, window_bounds = array<i64: 16, 32>}]} {
    %c0_i32 = arith.constant 0 : i32
    %0 = arith.cmpi eq, %arg1, %c0_i32 : i32
    %1 = arith.extui %0 : i1 to i32
    %c0_i32_0 = arith.constant 0 : i32
    %2 = arith.cmpi ne, %1, %c0_i32_0 : i32
    scf.if %2 {
      %c0_7 = arith.constant 0 : index
      %c0_8 = arith.constant 0 : index
      %10 = vector.load %arg2[%c0_7, %c0_8] : memref<16x256xf32, #tpu.memory_space<vmem>>, vector<16x256xf32>
      %c0_9 = arith.constant 0 : index
      %c0_10 = arith.constant 0 : index
      %11 = vector.load %arg3[%c0_9, %c0_10] : memref<16x256xf32, #tpu.memory_space<vmem>>, vector<16x256xf32>
      %12 = arith.mulf %10, %11 : vector<16x256xf32>
      %cst_11 = arith.constant dense<0.000000e+00> : vector<16xf32>
      %13 = vector.multi_reduction <add>, %12, %cst_11 [1] : vector<16x256xf32> to vector<16xf32>
      %14 = vector.shape_cast %13 : vector<16xf32> to vector<16x1xf32>
      %cst_12 = arith.constant 14.2857141 : f32
      %15 = vector.broadcast %cst_12 : f32 to vector<16x1xf32>
      %16 = arith.mulf %14, %15 : vector<16x1xf32>
      %c0_13 = arith.constant 0 : index
      %c0_14 = arith.constant 0 : index
      %17 = vector.load %arg5[%c0_13, %c0_14] : memref<16x1xf32, #tpu.memory_space<vmem>>, vector<16x1xf32>
      tpu.vector_store %arg5[%c0_13, %c0_14], %16 {strides = array<i32>} : memref<16x1xf32, #tpu.memory_space<vmem>>, vector<16x1xf32>,
    } else {
    }
    %c0 = arith.constant 0 : index
    %c0_1 = arith.constant 0 : index
    %3 = vector.load %arg2[%c0, %c0_1] : memref<16x256xf32, #tpu.memory_space<vmem>>, vector<16x256xf32>
    %4 = arith.truncf %3 : vector<16x256xf32> to vector<16x256xbf16>
    %c0_2 = arith.constant 0 : index
    %c0_3 = arith.constant 0 : index
    %5 = vector.load %arg4[%c0_2, %c0_3] : memref<256x32xbf16, #tpu.memory_space<vmem>>, vector<256x32xbf16>
    %cst = arith.constant dense<0.000000e+00> : vector<16x32xf32>
    %6 = tpu.matmul %4, %5, %cst {dimension_numbers = #tpu.dot_dimension_numbers<[1], [0], [0], [1], [0, 0, 1, 1], [], []>} : vector<16x256xbf16>, vector<256x32xbf16>, vector<16x32xf32> -> vector<16x32xf32>
    %cst_4 = arith.constant 14.2857141 : f32
    %7 = vector.broadcast %cst_4 : f32 to vector<16x32xf32>
    %8 = arith.mulf %6, %7 : vector<16x32xf32>
    %c0_5 = arith.constant 0 : index
    %c0_6 = arith.constant 0 : index
    %9 = vector.load %arg6[%c0_5, %c0_6] : memref<16x32xf32, #tpu.memory_space<vmem>>, vector<16x32xf32>
    tpu.vector_store %arg6[%c0_5, %c0_6], %8 {strides = array<i32>} : memref<16x32xf32, #tpu.memory_space<vmem>>, vector<16x32xf32>,
    return
  }
  func.func @transform_0(%arg0: i32, %arg1: i32) -> (i32, i32) {
    %c0_i32 = arith.constant 0 : i32
    %c0_i32_0 = arith.constant 0 : i32
    return %arg0, %c0_i32 : i32, i32
  }
  func.func @transform_1(%arg0: i32, %arg1: i32) -> (i32, i32) {
    %c0_i32 = arith.constant 0 : i32
    %c0_i32_0 = arith.constant 0 : i32
    return %arg0, %c0_i32 : i32, i32
  }
  func.func @transform_2(%arg0: i32, %arg1: i32) -> (i32, i32) {
    %c0_i32 = arith.constant 0 : i32
    %c0_i32_0 = arith.constant 0 : i32
    return %c0_i32, %arg1 : i32, i32
  }
  func.func @transform_3(%arg0: i32, %arg1: i32) -> (i32, i32) {
    %c0_i32 = arith.constant 0 : i32
    %c0_i32_0 = arith.constant 0 : i32
    return %arg0, %c0_i32 : i32, i32
  }
  func.func @transform_4(%arg0: i32, %arg1: i32) -> (i32, i32) {
    %c0_i32 = arith.constant 0 : i32
    return %arg0, %arg1 : i32, i32
  }
}

module attributes {stable_mosaic.version = 11 : i64} {
  func.func @_logits_kernel(%arg0: i32, %arg1: i32, %arg2: memref<2x128xf32, #tpu.memory_space<vmem>>, %arg3: memref<2x128xf32, #tpu.memory_space<vmem>>, %arg4: memref<128x256xbf16, #tpu.memory_space<vmem>>, %arg5: memref<2x1xf32, #tpu.memory_space<vmem>>, %arg6: memref<2x256xf32, #tpu.memory_space<vmem>>) attributes {dimension_semantics = [#tpu.dimension_semantics<parallel>, #tpu.dimension_semantics<arbitrary>], iteration_bounds = array<i64: 1, 2>, scalar_prefetch = 0 : i64, scratch_operands = 0 : i64, tpu.core_type = #tpu.core_type<tc>, window_params = [{transform_indices = @transform_0, window_bounds = array<i64: 2, 128>}, {transform_indices = @transform_1, window_bounds = array<i64: 2, 128>}, {transform_indices = @transform_2, window_bounds = array<i64: 128, 256>}, {transform_indices = @transform_3, window_bounds = array<i64: 2, 1>}, {transform_indices = @transform_4, window_bounds = array<i64: 2, 256>}]} {
    %c0_i32 = arith.constant 0 : i32
    %0 = arith.cmpi eq, %arg1, %c0_i32 : i32
    %1 = arith.extui %0 : i1 to i32
    %c0_i32_0 = arith.constant 0 : i32
    %2 = arith.cmpi ne, %1, %c0_i32_0 : i32
    scf.if %2 {
      %c0_7 = arith.constant 0 : index
      %c0_8 = arith.constant 0 : index
      %10 = vector.load %arg2[%c0_7, %c0_8] : memref<2x128xf32, #tpu.memory_space<vmem>>, vector<2x128xf32>
      %c0_9 = arith.constant 0 : index
      %c0_10 = arith.constant 0 : index
      %11 = vector.load %arg3[%c0_9, %c0_10] : memref<2x128xf32, #tpu.memory_space<vmem>>, vector<2x128xf32>
      %12 = arith.mulf %10, %11 : vector<2x128xf32>
      %cst_11 = arith.constant dense<0.000000e+00> : vector<2xf32>
      %13 = vector.multi_reduction <add>, %12, %cst_11 [1] : vector<2x128xf32> to vector<2xf32>
      %14 = vector.shape_cast %13 : vector<2xf32> to vector<2x1xf32>
      %cst_12 = arith.constant 14.2857141 : f32
      %15 = vector.broadcast %cst_12 : f32 to vector<2x1xf32>
      %16 = arith.mulf %14, %15 : vector<2x1xf32>
      %c0_13 = arith.constant 0 : index
      %c0_14 = arith.constant 0 : index
      %17 = vector.load %arg5[%c0_13, %c0_14] : memref<2x1xf32, #tpu.memory_space<vmem>>, vector<2x1xf32>
      tpu.vector_store %arg5[%c0_13, %c0_14], %16 {strides = array<i32>} : memref<2x1xf32, #tpu.memory_space<vmem>>, vector<2x1xf32>,
    } else {
    }
    %c0 = arith.constant 0 : index
    %c0_1 = arith.constant 0 : index
    %3 = vector.load %arg2[%c0, %c0_1] : memref<2x128xf32, #tpu.memory_space<vmem>>, vector<2x128xf32>
    %4 = arith.truncf %3 : vector<2x128xf32> to vector<2x128xbf16>
    %c0_2 = arith.constant 0 : index
    %c0_3 = arith.constant 0 : index
    %5 = vector.load %arg4[%c0_2, %c0_3] : memref<128x256xbf16, #tpu.memory_space<vmem>>, vector<128x256xbf16>
    %cst = arith.constant dense<0.000000e+00> : vector<2x256xf32>
    %6 = tpu.matmul %4, %5, %cst {dimension_numbers = #tpu.dot_dimension_numbers<[1], [0], [0], [1], [0, 0, 1, 1], [], []>} : vector<2x128xbf16>, vector<128x256xbf16>, vector<2x256xf32> -> vector<2x256xf32>
    %cst_4 = arith.constant 14.2857141 : f32
    %7 = vector.broadcast %cst_4 : f32 to vector<2x256xf32>
    %8 = arith.mulf %6, %7 : vector<2x256xf32>
    %c0_5 = arith.constant 0 : index
    %c0_6 = arith.constant 0 : index
    %9 = vector.load %arg6[%c0_5, %c0_6] : memref<2x256xf32, #tpu.memory_space<vmem>>, vector<2x256xf32>
    tpu.vector_store %arg6[%c0_5, %c0_6], %8 {strides = array<i32>} : memref<2x256xf32, #tpu.memory_space<vmem>>, vector<2x256xf32>,
    return
  }
  func.func @transform_0(%arg0: i32, %arg1: i32) -> (i32, i32) {
    %c0_i32 = arith.constant 0 : i32
    %c0_i32_0 = arith.constant 0 : i32
    return %arg0, %c0_i32 : i32, i32
  }
  func.func @transform_1(%arg0: i32, %arg1: i32) -> (i32, i32) {
    %c0_i32 = arith.constant 0 : i32
    %c0_i32_0 = arith.constant 0 : i32
    return %arg0, %c0_i32 : i32, i32
  }
  func.func @transform_2(%arg0: i32, %arg1: i32) -> (i32, i32) {
    %c0_i32 = arith.constant 0 : i32
    %c0_i32_0 = arith.constant 0 : i32
    return %c0_i32, %arg1 : i32, i32
  }
  func.func @transform_3(%arg0: i32, %arg1: i32) -> (i32, i32) {
    %c0_i32 = arith.constant 0 : i32
    %c0_i32_0 = arith.constant 0 : i32
    return %arg0, %c0_i32 : i32, i32
  }
  func.func @transform_4(%arg0: i32, %arg1: i32) -> (i32, i32) {
    %c0_i32 = arith.constant 0 : i32
    return %arg0, %arg1 : i32, i32
  }
}

</mosaic_0001>

<bundles_post_ra>
// kernel: crosscl_forward.23
= control target key start
LH: loop header
LB: loop body
LE: loop exit
PB: predicated region body
PF: predicated region fallthrough
CT: control target
= control target key end

     0   :  { %s651_s0 = inlined_call_operand.vmem [shape: s32[8], index: 0, kind: input, shape index: {}]   ;;  %s652_s1 = inlined_call_operand.vmem [shape: f32[2,144,256], index: 1, kind: input, shape index: {}]   ;;  %s653_s2 = inlined_call_operand.vmem [shape: f32[8,1,144], index: 2, kind: input, shape index: {}]   ;;  %s654_s3 = inlined_call_operand.vmem [shape: f32[8,1,1], index: 3, kind: input, shape index: {}]   ;;  %s655_s4 = inlined_call_operand.vmem [shape: f32[8,1,256], index: 4, kind: output, shape index: {}]  }
   0x1   :  { %s9_s17 = sshll.u32 %s651_s0, 4  ;;  %s10_s17 = int_to_ptr.vmem [resolvable:$true] %s9_s17 }
   0x2   :  { %s518_s18 = scalar_lea.vmem %s10_s17, 16  ;;  %p523_p1 = scmp.lt.s32.totalorder %s10_s17, %s10_s17 }
   0x3   :  { %p519_p0 = scmp.ne.s32.totalorder %s10_s17, %s518_s18  ;;  %p524_p2 = scmp.lt.s32.totalorder %s518_s18, %s518_s18 }
   0x5   :  { %p525_p3 = por %p524_p2, %p523_p1 }
   0x7   :  { %p526_p4 = pnand %p525_p3, %p519_p0 }
   0x9   :  { %529 = shalt.err (!%p526_p4)  }
   0xa   :  { %s540_s19 = smov [#allocation3]  }
   0xb   :  { %12 = dma.vmem_to_smem %s10_s17, 16, %s540_s19, [#allocation2] }
   0xc   :  { %534 = dma.done.wait [#allocation2], 16 }
   0xd   :  { %535 = vsyncadd [#allocation2], 4294967280 }
   0xe   :  { %14 = sfence }
   0xf   :  { %s571_s20 = smov 0  }
  0x10 LB: > { %s456_s0 = sadd.s32 4294967295, %s538_s20   ;;  %p460_p5 = scmp.ge.s32.totalorder %s538_s20, 1  ;;  %s538_s20 = sphi %s571_s20, %s20_s20  }
  0x11   : > { %p165_p6 = scmp.lt.s32.totalorder %s538_s20, 9 }
  0x13   : > { %p166_p7 = pnand %p460_p5, %p165_p6 }
  0x14   : > { %s196_s21 = sld [smem:[#allocation3 + %s456_s0]] (!%p166_p7)  ;;  %p203_p8 = scmp.lt.s32.totalorder (!%p166_p7), %s456_s0, 7  ;;  %v253_v0 = vlaneseq (!%p166_p7)  ;;  %v541_v1 = vmov (!%p166_p7), 0   ;;  %vm262_vm0 = vcmask (!%p166_p7), 130048   ;;  %vm349_vm1 = vcmask (!%p166_p7), 1040384  }
  0x15   : > { %169 = sbr.rel (%p166_p7) target bundleno = 456 (0x1c8), region = 32  ;;  %515 = vset.pattern.permute.xlu0 (!%p166_p7), %v541_v1 }
  0x16   : > { %v582_v2 = vshrl.u32 (!%p166_p7), %v253_v0, 7  ;;  %vm379_vm2 = vcmp.lt.s32.totalorder (!%p166_p7), %v253_v0, 256 }
  0x18   : > { %v259_v3 = vsub.s32 (!%p166_p7), 1, %v582_v2  ;;  %v255_v60 = vsub.s32 (!%p166_p7), 0, %v582_v2 }
  0x1a   : > { %p197_p9 = scmp.lt.s32.totalorder (!%p166_p7), %s196_s21, 1 }
  0x1c   : > { %s657_s0 = smov (!%p203_p8, %s456_s0), 7  ;;  %s659_s21 = smov (!%p197_p9, %s196_s21), 1 }
  0x1d   : > { %s462_s22 = sshll.u32 %s657_s0, 1  ;;  %s209_s25 = scalar_lea.vmem %s654_s3, %s657_s0 }
  0x1e   : > { %s206_s28 = scalar_lea.vmem %s653_s2, %s462_s22  ;;  %v251_v4 = vld [vmem:[%s209_s25] sm:$0x1]  ;;  %s503_s29 = smul.u32 288, %s659_s21 }
  0x1f   : > { %v595_v5 = vld [vmem:[%s206_s28] sm:$0x3]  ;;  %338 = vperm.xlu0 %515, %v251_v4   ;;  %s213_s9 = scalar_lea.vmem %s655_s4, %s462_s22 }
  0x20   : > { %v260_v6 = vrot.slane %v595_v5, %v259_v3  ;;  %s601_s6 = scalar_lea.vmem %s652_s1, %s503_s29  ;;  %v256_v62 = vrot.slane %v595_v5, %v255_v60  ;;  %v542_v5 = vmov 1966171168  }
  0x21   : > { %v215_v7 = vld [vmem:[%s601_s6 + $0x8] sm:$0xff]  ;;  %v217_v8 = vld [vmem:[%s601_s6 + $0x18] sm:$0xff]  ;;  %v214_v9 = vld [vmem:[%s601_s6] sm:$0xff] }
  0x22   : > { %464 = vmatprep.mubr.msk.f32.mxu0 %vm262_vm0, %v260_v6  ;;  %v467_v10 = vpack.c.bf16 %v217_v8, %v215_v7  ;;  %v216_v11 = vld [vmem:[%s601_s6 + $0x10] sm:$0xff]  ;;  %v219_v12 = vld [vmem:[%s601_s6 + $0x28] sm:$0xff]  ;;  %v221_v13 = vld [vmem:[%s601_s6 + $0x38] sm:$0xff] }
  0x23   : > { %v469_v14 = vpack.c.bf16 %v216_v11, %v214_v9  ;;  %v471_v15 = vpack.c.bf16 %v221_v13, %v219_v12  ;;  %v218_v16 = vld [vmem:[%s601_s6 + $0x20] sm:$0xff]  ;;  %v220_v17 = vld [vmem:[%s601_s6 + $0x30] sm:$0xff]  ;;  %v223_v18 = vld [vmem:[%s601_s6 + $0x48] sm:$0xff] }
  0x24   : > { %468 = vmatprep.subr.bf16.mxu0 %v467_v10  ;;  %v225_v19 = vld [vmem:[%s601_s6 + $0x58] sm:$0xff]  ;;  %v473_v20 = vpack.c.bf16 %v220_v17, %v218_v16  ;;  %v222_v22 = vld [vmem:[%s601_s6 + $0x40] sm:$0xff]  ;;  %v224_v23 = vld [vmem:[%s601_s6 + $0x50] sm:$0xff] }
  0x25   : > { %470 = vmatpush1.bf16.msra.mxu0 %v469_v14  ;;  %v475_v21 = vpack.c.bf16 %v225_v19, %v223_v18  ;;  %v227_v24 = vld [vmem:[%s601_s6 + $0x68] sm:$0xff]  ;;  %v229_v25 = vld [vmem:[%s601_s6 + $0x78] sm:$0xff]  ;;  %v477_v26 = vpack.c.bf16 %v224_v23, %v222_v22  ;;  %v226_v28 = vld [vmem:[%s601_s6 + $0x60] sm:$0xff] }
  0x26   : > { %472 = vmatprep.subr.bf16.mxu0 %v471_v15  ;;  %v479_v27 = vpack.c.bf16 %v229_v25, %v227_v24  ;;  %v228_v29 = vld [vmem:[%s601_s6 + $0x70] sm:$0xff]  ;;  %v231_v30 = vld [vmem:[%s601_s6 + $0x88] sm:$0xff]  ;;  %v233_v31 = vld [vmem:[%s601_s6 + $0x98] sm:$0xff]  ;;  %v363_v15 = vunpack.c.l.s4 %v542_v5 }
  0x27   : > { %v481_v32 = vpack.c.bf16 %v228_v29, %v226_v28  ;;  %v483_v33 = vpack.c.bf16 %v233_v31, %v231_v30  ;;  %v230_v34 = vld [vmem:[%s601_s6 + $0x80] sm:$0xff]  ;;  %v232_v35 = vld [vmem:[%s601_s6 + $0x90] sm:$0xff]  ;;  %v235_v36 = vld [vmem:[%s601_s6 + $0xa8] sm:$0xff] }
  0x28   : > { %v237_v37 = vld [vmem:[%s601_s6 + $0xb8] sm:$0xff]  ;;  %v485_v38 = vpack.c.bf16 %v232_v35, %v230_v34  ;;  %v234_v40 = vld [vmem:[%s601_s6 + $0xa0] sm:$0xff]  ;;  %v236_v41 = vld [vmem:[%s601_s6 + $0xb0] sm:$0xff]  ;;  %v364_v16 = vunpack.c.0.s8 %v363_v15 }
  0x29   : > { %474 = vmatpush1.bf16.msra.mxu0 %v473_v20  ;;  %v487_v39 = vpack.c.bf16 %v237_v37, %v235_v36  ;;  %v239_v42 = vld [vmem:[%s601_s6 + $0xc8] sm:$0xff]  ;;  %v241_v43 = vld [vmem:[%s601_s6 + $0xd8] sm:$0xff]  ;;  %v489_v44 = vpack.c.bf16 %v236_v41, %v234_v40  ;;  %v238_v46 = vld [vmem:[%s601_s6 + $0xc0] sm:$0xff] }
  0x2a   : > { %476 = vmatprep.subr.bf16.mxu0 %v475_v21  ;;  %v491_v45 = vpack.c.bf16 %v241_v43, %v239_v42  ;;  %v240_v47 = vld [vmem:[%s601_s6 + $0xd0] sm:$0xff]  ;;  %v243_v48 = vld [vmem:[%s601_s6 + $0xe8] sm:$0xff]  ;;  %v245_v49 = vld [vmem:[%s601_s6 + $0xf8] sm:$0xff]  ;;  %v367_v18 = vsub.s32 %v364_v16, %v582_v2 }
  0x2b   : > { %v493_v50 = vpack.c.bf16 %v240_v47, %v238_v46  ;;  %v495_v51 = vpack.c.bf16 %v245_v49, %v243_v48  ;;  %v242_v52 = vld [vmem:[%s601_s6 + $0xe0] sm:$0xff]  ;;  %v244_v53 = vld [vmem:[%s601_s6 + $0xf0] sm:$0xff]  ;;  %v247_v54 = vld [vmem:[%s601_s6 + $0x108] sm:$0xff] }
  0x2c   : > { %v249_v55 = vld [vmem:[%s601_s6 + $0x118] sm:$0xff]  ;;  %v497_v56 = vpack.c.bf16 %v244_v53, %v242_v52  ;;  %v246_v58 = vld [vmem:[%s601_s6 + $0x100] sm:$0xff]  ;;  %v248_v59 = vld [vmem:[%s601_s6 + $0x110] sm:$0xff] }
  0x2d   : > { %478 = vmatpush1.bf16.msra.mxu0 %v477_v26  ;;  %v499_v57 = vpack.c.bf16 %v249_v55, %v247_v54  ;;  %v501_v61 = vpack.c.bf16 %v248_v59, %v246_v58 }
  0x2e   : > { %480 = vmatprep.subr.bf16.mxu0 %v479_v27 }
  0x31   : > { %482 = vmatpush1.bf16.msra.mxu0 %v481_v32 }
  0x32   : > { %484 = vmatprep.subr.bf16.mxu0 %v483_v33 }
  0x35   : > { %486 = vmatpush1.bf16.msra.mxu0 %v485_v38 }
  0x36   : > { %488 = vmatprep.subr.bf16.mxu0 %v487_v39 }
  0x39   : > { %490 = vmatpush1.bf16.msra.mxu0 %v489_v44 }
  0x3a   : > { %492 = vmatprep.subr.bf16.mxu0 %v491_v45 }
  0x3d   : > { %494 = vmatpush1.bf16.msra.mxu0 %v493_v50 }
  0x3e   : > { %496 = vmatprep.subr.bf16.mxu0 %v495_v51 }
  0x41   : > { %498 = vmatpush1.bf16.msra.mxu0 %v497_v56 }
  0x42   : > { %500 = vmatprep.subr.bf16.mxu0 %v499_v57 }
  0x45   : > { %502 = vmatpush1.bf16.msra.mxu0 %v501_v61 }
  0x48   : > { %330 = vmatmul.mubr.f32.vlgmr.msra.gmra.mrb[0].mxu0 %v256_v62 }
  0x9e   : > { %v339_v63 = vpop.permute.xlu0 %338 }
  0x9f   : > { %v344_v1 = vrot.slane %v339_v63, %v255_v60 }
 0x11b   : > { %v331_v3 = vpop.f32.mrb[0].mxu0 }
 0x11c   : > { %v345_v4 = vmul.f32 %v344_v1, %v331_v3  ;;  %v333_v6 = vpop.f32.mrb[1].mxu0 }
 0x11d   : > { %v346_v7 = vmul.f32 %v344_v1, %v333_v6 }
 0x11e   : > { %v347_v8 = vmul.f32 %v345_v4, %v345_v4 }
 0x11f   : > { %v348_v9 = vmul.f32 %v346_v7, %v346_v7 }
 0x120   : > { %v350_v10 = vsel %vm349_vm1, %v347_v8, 0.0 }
 0x121   : > { %v351_v11 = vsel %vm349_vm1, %v348_v9, 0.0 }
 0x122   : > { %v352_v12 = vadd.f32 %v351_v11, %v350_v10 }
 0x124   : > { %353 = vadd.xlane.f32.xlu0 %v352_v12 }
 0x1b1   : > { %v354_v13 = vpop.xlane.xlu0 %353 }
 0x1b2   : > { %v355_v14 = vmax.f32 %v354_v13, 1e-24 }
 0x1b4   : > { %516 = vrsqrt.f32 %v355_v14 }
 0x1be   : > { %v517_v17 = vpop.eup %516 }
 0x1bf   : > { %v357_v19 = vmul.f32 %v517_v17, %v345_v4  ;;  %v358_v20 = vmul.f32 %v517_v17, %v346_v7 }
 0x1c1   : > { %v361_v21 = vcombine.low %v357_v19, %v358_v20 }
 0x1c3   : > { %v368_v22 = vrot.slane %v361_v21, %v367_v18 }
 0x1c5   : > { %v375_v23 = vrot.slane %v368_v22, %v367_v18 }
 0x1c7   : > { %381 = vst.msk [vmem:[%s213_s9] sm:$0x3] %vm379_vm2, %v375_v23 }
 0x1c8 PF: > { %s20_s20 = sadd.s32 1, %s538_s20  }
 0x1c9   : > { %p17_p10 = scmp.ge.s32.totalorder %s20_s20, 10  }
 0x1cb   :  { %19 = sbr.rel (!%p17_p10) target bundleno = 16 (0x10), region = 68 }

// kernel: crosscl_forward.24
= control target key start
LH: loop header
LB: loop body
LE: loop exit
PB: predicated region body
PF: predicated region fallthrough
CT: control target
= control target key end

     0   :  { %s130_s0 = inlined_call_operand.vmem [shape: f32[32,256], index: 0, kind: input, shape index: {}]   ;;  %s131_s1 = inlined_call_operand.vmem [shape: f32[32,256], index: 1, kind: output, shape index: {}]  }
   0x1   :  { %v12_v0 = vld [vmem:[%s130_s0 + $0x20] sm:$0xff]  ;;  %v13_v1 = vld [vmem:[%s130_s0 + $0x28] sm:$0xff]  ;;  %v14_v7 = vld [vmem:[%s130_s0 + $0x30] sm:$0xff] }
   0x2   :  { %v8_v2 = vld [vmem:[%s130_s0] sm:$0xff]  ;;  %v20_v3 = vmul.f32 %v12_v0, %v12_v0  ;;  %v21_v4 = vmul.f32 %v13_v1, %v13_v1  ;;  %v9_v5 = vld [vmem:[%s130_s0 + $0x8] sm:$0xff]  ;;  %v15_v8 = vld [vmem:[%s130_s0 + $0x38] sm:$0xff]  ;;  %v22_v10 = vmul.f32 %v14_v7, %v14_v7 }
   0x3   :  { %v16_v6 = vmul.f32 %v8_v2, %v8_v2  ;;  %v17_v9 = vmul.f32 %v9_v5, %v9_v5  ;;  %v23_v11 = vmul.f32 %v15_v8, %v15_v8  ;;  %v10_v12 = vld [vmem:[%s130_s0 + $0x10] sm:$0xff]  ;;  %v11_v13 = vld [vmem:[%s130_s0 + $0x18] sm:$0xff] }
   0x4   :  { %v30_v14 = vadd.f32 %v21_v4, %v20_v3  ;;  %v18_v15 = vmul.f32 %v10_v12, %v10_v12  ;;  %v19_v16 = vmul.f32 %v11_v13, %v11_v13 }
   0x5   :  { %v24_v17 = vadd.f32 %v17_v9, %v16_v6  ;;  %v33_v18 = vadd.f32 %v23_v11, %v22_v10 }
   0x6   :  { %31 = vadd.xlane.f32.xlu1 %v30_v14  ;;  %v27_v19 = vadd.f32 %v19_v16, %v18_v15 }
   0x7   :  { %25 = vadd.xlane.f32.xlu0 %v24_v17 }
   0xa   :  { %34 = vadd.xlane.f32.xlu1 %v33_v18 }
   0xb   :  { %28 = vadd.xlane.f32.xlu0 %v27_v19 }
  0x93   :  { %v32_v20 = vpop.xlane.xlu1 %31 }
  0x94   :  { %v38_v21 = vmax.f32 %v32_v20, 1e-24  ;;  %v26_v22 = vpop.xlane.xlu0 %25 }
  0x95   :  { %v36_v23 = vmax.f32 %v26_v22, 1e-24 }
  0x96   :  { %64 = vrsqrt.f32 %v38_v21 }
  0x97   :  { %66 = vrsqrt.f32 %v36_v23  ;;  %v35_v24 = vpop.xlane.xlu1 %34 }
  0x98   :  { %v39_v25 = vmax.f32 %v35_v24, 1e-24  ;;  %v29_v26 = vpop.xlane.xlu0 %28 }
  0x99   :  { %v37_v27 = vmax.f32 %v29_v26, 1e-24 }
  0x9a   :  { %68 = vrsqrt.f32 %v39_v25 }
  0x9b   :  { %70 = vrsqrt.f32 %v37_v27 }
  0xa0   :  { %v65_v28 = vpop.eup %64 }
  0xa1   :  { %v67_v29 = vpop.eup %66  ;;  %v48_v30 = vmul.f32 %v65_v28, %v12_v0  ;;  %v49_v31 = vmul.f32 %v65_v28, %v13_v1 }
  0xa2   :  { %v44_v32 = vmul.f32 %v67_v29, %v8_v2  ;;  %v45_v33 = vmul.f32 %v67_v29, %v9_v5 }
  0xa3   :  { %56 = vst [vmem:[%s131_s1 + $0x20] sm:$0xff] %v48_v30  ;;  %57 = vst [vmem:[%s131_s1 + $0x28] sm:$0xff] %v49_v31 }
  0xa4   :  { %v69_v34 = vpop.eup %68  ;;  %52 = vst [vmem:[%s131_s1] sm:$0xff] %v44_v32  ;;  %53 = vst [vmem:[%s131_s1 + $0x8] sm:$0xff] %v45_v33 }
  0xa5   :  { %v71_v35 = vpop.eup %70  ;;  %v50_v36 = vmul.f32 %v69_v34, %v14_v7  ;;  %v51_v37 = vmul.f32 %v69_v34, %v15_v8 }
  0xa6   :  { %v46_v38 = vmul.f32 %v71_v35, %v10_v12  ;;  %v47_v39 = vmul.f32 %v71_v35, %v11_v13 }
  0xa7   :  { %58 = vst [vmem:[%s131_s1 + $0x30] sm:$0xff] %v50_v36  ;;  %59 = vst [vmem:[%s131_s1 + $0x38] sm:$0xff] %v51_v37 }
  0xa8   :  { %54 = vst [vmem:[%s131_s1 + $0x10] sm:$0xff] %v46_v38  ;;  %55 = vst [vmem:[%s131_s1 + $0x18] sm:$0xff] %v47_v39 }

// kernel: crosscl_forward.13
= control target key start
LH: loop header
LB: loop body
LE: loop exit
PB: predicated region body
PF: predicated region fallthrough
CT: control target
= control target key end

     0   :  { %v76_v60 = vlaneseq  ;;  %s728_s1 = inlined_call_operand.vmem [shape: bf16[256,256], index: 1, kind: input, shape index: {}]   ;;  %s729_s0 = inlined_call_operand.vmem [shape: f32[72,256], index: 0, kind: input, shape index: {}]   ;;  %s730_s2 = inlined_call_operand.vmem [shape: f32[1,256], index: 2, kind: input, shape index: {}]   ;;  %s731_s3 = inlined_call_operand.vmem [shape: f32[72,256], index: 3, kind: output, shape index: {}]  }
   0x1   :  { %v431_v0 = vld [vmem:[%s728_s1 + $0x4] ss:$8 sps:$4 sm:$0xff]   ;;  %v433_v1 = vld [vmem:[%s728_s1] ss:$8 sps:$4 sm:$0xff]   ;;  %v434_v2 = vld [vmem:[%s728_s1 + $0x14] ss:$8 sps:$4 sm:$0xff]  }
   0x2   :  { %246 = vmatprep.subr.bf16.mxu0 %v431_v0  ;;  %399 = vmatprep.subr.bf16.mxu1 %v431_v0  ;;  %v436_v3 = vld [vmem:[%s728_s1 + $0x10] ss:$8 sps:$4 sm:$0xff]   ;;  %v437_v4 = vld [vmem:[%s728_s1 + $0x24] ss:$8 sps:$4 sm:$0xff]   ;;  %v439_v5 = vld [vmem:[%s728_s1 + $0x20] ss:$8 sps:$4 sm:$0xff]  }
   0x3   :  { %247 = vmatpush1.bf16.msra.mxu0 %v433_v1  ;;  %415 = vmatpush1.bf16.msra.mxu1 %v433_v1  ;;  %v440_v6 = vld [vmem:[%s728_s1 + $0x34] ss:$8 sps:$4 sm:$0xff]   ;;  %v442_v7 = vld [vmem:[%s728_s1 + $0x30] ss:$8 sps:$4 sm:$0xff]   ;;  %v443_v8 = vld [vmem:[%s728_s1 + $0x44] ss:$8 sps:$4 sm:$0xff]  }
   0x4   :  { %248 = vmatprep.subr.bf16.mxu0 %v434_v2  ;;  %400 = vmatprep.subr.bf16.mxu1 %v434_v2  ;;  %v445_v9 = vld [vmem:[%s728_s1 + $0x40] ss:$8 sps:$4 sm:$0xff]   ;;  %v446_v10 = vld [vmem:[%s728_s1 + $0x54] ss:$8 sps:$4 sm:$0xff]   ;;  %v448_v11 = vld [vmem:[%s728_s1 + $0x50] ss:$8 sps:$4 sm:$0xff]  }
   0x5   :  { %v449_v12 = vld [vmem:[%s728_s1 + $0x64] ss:$8 sps:$4 sm:$0xff]   ;;  %v17_v14 = vld [vmem:[%s729_s0 + $0x18] sm:$0xff]  ;;  %v451_v17 = vld [vmem:[%s728_s1 + $0x60] ss:$8 sps:$4 sm:$0xff]   ;;  %v77_v61 = vshrl.u32 %v76_v60, 7 }
   0x6   :  { %v15_v13 = vld [vmem:[%s729_s0 + $0x8] sm:$0xff]  ;;  %v29_v18 = vld [vmem:[%s729_s0 + $0x78] sm:$0xff]  ;;  %v14_v38 = vld [vmem:[%s729_s0] sm:$0xff] }
   0x7   :  { %249 = vmatpush1.bf16.msra.mxu0 %v436_v3  ;;  %416 = vmatpush1.bf16.msra.mxu1 %v436_v3  ;;  %v33_v15 = vpack.c.bf16 %v17_v14, %v15_v13  ;;  %v27_v16 = vld [vmem:[%s729_s0 + $0x68] sm:$0xff]  ;;  %v452_v19 = vld [vmem:[%s728_s1 + $0x74] ss:$8 sps:$4 sm:$0xff]   ;;  %v454_v21 = vld [vmem:[%s728_s1 + $0x70] ss:$8 sps:$4 sm:$0xff]   ;;  %v78_v62 = vsub.s32 0, %v77_v61 }
   0x8   :  { %250 = vmatprep.subr.bf16.mxu0 %v437_v4  ;;  %401 = vmatprep.subr.bf16.mxu1 %v437_v4  ;;  %v39_v20 = vpack.c.bf16 %v29_v18, %v27_v16  ;;  %v455_v22 = vld [vmem:[%s728_s1 + $0x84] ss:$8 sps:$4 sm:$0xff]   ;;  %v457_v23 = vld [vmem:[%s728_s1 + $0x80] ss:$8 sps:$4 sm:$0xff]   ;;  %v458_v24 = vld [vmem:[%s728_s1 + $0x94] ss:$8 sps:$4 sm:$0xff]  }
   0x9   :  { %278 = vmatprep.mubr.bf16.mxu0 %v33_v15  ;;  %v460_v25 = vld [vmem:[%s728_s1 + $0x90] ss:$8 sps:$4 sm:$0xff]   ;;  %v461_v26 = vld [vmem:[%s728_s1 + $0xa4] ss:$8 sps:$4 sm:$0xff]   ;;  %v463_v27 = vld [vmem:[%s728_s1 + $0xa0] ss:$8 sps:$4 sm:$0xff]  }
   0xa   :  { %308 = vmatprep.mubr.bf16.mxu1 %v39_v20  ;;  %v464_v28 = vld [vmem:[%s728_s1 + $0xb4] ss:$8 sps:$4 sm:$0xff]   ;;  %v466_v29 = vld [vmem:[%s728_s1 + $0xb0] ss:$8 sps:$4 sm:$0xff]   ;;  %v467_v30 = vld [vmem:[%s728_s1 + $0xc4] ss:$8 sps:$4 sm:$0xff]  }
   0xb   :  { %251 = vmatpush1.bf16.msra.mxu0 %v439_v5  ;;  %417 = vmatpush1.bf16.msra.mxu1 %v439_v5  ;;  %v469_v31 = vld [vmem:[%s728_s1 + $0xc0] ss:$8 sps:$4 sm:$0xff]   ;;  %v470_v32 = vld [vmem:[%s728_s1 + $0xd4] ss:$8 sps:$4 sm:$0xff]   ;;  %v472_v33 = vld [vmem:[%s728_s1 + $0xd0] ss:$8 sps:$4 sm:$0xff]  }
   0xc   :  { %252 = vmatprep.subr.bf16.mxu0 %v440_v6  ;;  %402 = vmatprep.subr.bf16.mxu1 %v440_v6  ;;  %v473_v34 = vld [vmem:[%s728_s1 + $0xe4] ss:$8 sps:$4 sm:$0xff]   ;;  %v475_v35 = vld [vmem:[%s728_s1 + $0xe0] ss:$8 sps:$4 sm:$0xff]   ;;  %v476_v36 = vld [vmem:[%s728_s1 + $0xf4] ss:$8 sps:$4 sm:$0xff]  }
   0xd   :  { %v478_v37 = vld [vmem:[%s728_s1 + $0xf0] ss:$8 sps:$4 sm:$0xff]   ;;  %v26_v40 = vld [vmem:[%s729_s0 + $0x60] sm:$0xff]  ;;  %v19_v42 = vld [vmem:[%s729_s0 + $0x28] sm:$0xff]  ;;  %v82_v0 = vsub.s32 1, %v77_v61 }
   0xe   :  { %v16_v39 = vld [vmem:[%s729_s0 + $0x10] sm:$0xff]  ;;  %v21_v43 = vld [vmem:[%s729_s0 + $0x38] sm:$0xff]  ;;  %v31_v44 = vld [vmem:[%s729_s0 + $0x88] sm:$0xff] }
   0xf   :  { %253 = vmatpush1.bf16.msra.mxu0 %v442_v7  ;;  %418 = vmatpush1.bf16.msra.mxu1 %v442_v7  ;;  %v28_v41 = vld [vmem:[%s729_s0 + $0x70] sm:$0xff]  ;;  %v32_v45 = vpack.c.bf16 %v16_v39, %v14_v38  ;;  %v35_v47 = vpack.c.bf16 %v21_v43, %v19_v42  ;;  %v41_v48 = vpack.c.bf16 %v31_v44, %v31_v44  ;;  %v18_v49 = vld [vmem:[%s729_s0 + $0x20] sm:$0xff]  ;;  %v23_v52 = vld [vmem:[%s729_s0 + $0x48] sm:$0xff] }
  0x10   :  { %254 = vmatprep.subr.bf16.mxu0 %v443_v8  ;;  %403 = vmatprep.subr.bf16.mxu1 %v443_v8  ;;  %v38_v46 = vpack.c.bf16 %v28_v41, %v26_v40  ;;  %v20_v50 = vld [vmem:[%s729_s0 + $0x30] sm:$0xff]  ;;  %v30_v51 = vld [vmem:[%s729_s0 + $0x80] sm:$0xff]  ;;  %v25_v53 = vld [vmem:[%s729_s0 + $0x58] sm:$0xff] }
  0x11   :  { %v34_v54 = vpack.c.bf16 %v20_v50, %v18_v49  ;;  %v40_v55 = vpack.c.bf16 %v30_v51, %v30_v51  ;;  %v37_v56 = vpack.c.bf16 %v25_v53, %v23_v52  ;;  %v22_v57 = vld [vmem:[%s729_s0 + $0x40] sm:$0xff]  ;;  %v24_v58 = vld [vmem:[%s729_s0 + $0x50] sm:$0xff] }
  0x12   :  { %v36_v59 = vpack.c.bf16 %v24_v58, %v22_v57  ;;  %v74_v63 = vld [vmem:[%s730_s2] sm:$0x3] }
  0x13   :  { %255 = vmatpush1.bf16.msra.mxu0 %v445_v9  ;;  %419 = vmatpush1.bf16.msra.mxu1 %v445_v9  ;;  %v652_v1 = vrot.slane %v74_v63, %v78_v62  ;;  %v654_v2 = vrot.slane %v74_v63, %v82_v0 }
  0x14   :  { %256 = vmatprep.subr.bf16.mxu0 %v446_v10  ;;  %404 = vmatprep.subr.bf16.mxu1 %v446_v10 }
  0x17   :  { %257 = vmatpush1.bf16.msra.mxu0 %v448_v11  ;;  %420 = vmatpush1.bf16.msra.mxu1 %v448_v11 }
  0x18   :  { %258 = vmatprep.subr.bf16.mxu0 %v449_v12  ;;  %405 = vmatprep.subr.bf16.mxu1 %v449_v12 }
  0x1b   :  { %259 = vmatpush1.bf16.msra.mxu0 %v451_v17  ;;  %421 = vmatpush1.bf16.msra.mxu1 %v451_v17 }
  0x1c   :  { %260 = vmatprep.subr.bf16.mxu0 %v452_v19  ;;  %406 = vmatprep.subr.bf16.mxu1 %v452_v19 }
  0x1f   :  { %261 = vmatpush1.bf16.msra.mxu0 %v454_v21  ;;  %422 = vmatpush1.bf16.msra.mxu1 %v454_v21 }
  0x20   :  { %262 = vmatprep.subr.bf16.mxu0 %v455_v22  ;;  %407 = vmatprep.subr.bf16.mxu1 %v455_v22 }
  0x23   :  { %263 = vmatpush1.bf16.msra.mxu0 %v457_v23  ;;  %423 = vmatpush1.bf16.msra.mxu1 %v457_v23 }
  0x24   :  { %264 = vmatprep.subr.bf16.mxu0 %v458_v24  ;;  %408 = vmatprep.subr.bf16.mxu1 %v458_v24 }
  0x27   :  { %265 = vmatpush1.bf16.msra.mxu0 %v460_v25  ;;  %424 = vmatpush1.bf16.msra.mxu1 %v460_v25 }
  0x28   :  { %266 = vmatprep.subr.bf16.mxu0 %v461_v26  ;;  %409 = vmatprep.subr.bf16.mxu1 %v461_v26 }
  0x2b   :  { %267 = vmatpush1.bf16.msra.mxu0 %v463_v27  ;;  %425 = vmatpush1.bf16.msra.mxu1 %v463_v27 }
  0x2c   :  { %268 = vmatprep.subr.bf16.mxu0 %v464_v28  ;;  %410 = vmatprep.subr.bf16.mxu1 %v464_v28 }
  0x2f   :  { %269 = vmatpush1.bf16.msra.mxu0 %v466_v29  ;;  %426 = vmatpush1.bf16.msra.mxu1 %v466_v29 }
  0x30   :  { %270 = vmatprep.subr.bf16.mxu0 %v467_v30  ;;  %411 = vmatprep.subr.bf16.mxu1 %v467_v30 }
  0x33   :  { %271 = vmatpush1.bf16.msra.mxu0 %v469_v31  ;;  %427 = vmatpush1.bf16.msra.mxu1 %v469_v31 }
  0x34   :  { %272 = vmatprep.subr.bf16.mxu0 %v470_v32  ;;  %412 = vmatprep.subr.bf16.mxu1 %v470_v32 }
  0x37   :  { %273 = vmatpush1.bf16.msra.mxu0 %v472_v33  ;;  %428 = vmatpush1.bf16.msra.mxu1 %v472_v33 }
  0x38   :  { %274 = vmatprep.subr.bf16.mxu0 %v473_v34  ;;  %413 = vmatprep.subr.bf16.mxu1 %v473_v34 }
  0x3b   :  { %275 = vmatpush1.bf16.msra.mxu0 %v475_v35  ;;  %429 = vmatpush1.bf16.msra.mxu1 %v475_v35 }
  0x3c   :  { %276 = vmatprep.subr.bf16.mxu0 %v476_v36  ;;  %414 = vmatprep.subr.bf16.mxu1 %v476_v36 }
  0x3f   :  { %277 = vmatpush1.bf16.msra.mxu0 %v478_v37  ;;  %430 = vmatpush1.bf16.msra.mxu1 %v478_v37 }
  0x42   :  { %279 = vmatmul.mubr.bf16.vlgmr.msra.gmra.mrb[0].mxu0 %v32_v45  ;;  %309 = vmatmul.mubr.bf16.vlgmr.msra.gmra.mrb[0].mxu1 %v38_v46 }
  0x43   :  { %288 = vmatprep.mubr.bf16.mxu0 %v35_v47  ;;  %318 = vmatprep.mubr.bf16.mxu1 %v41_v48 }
  0x4a   :  { %289 = vmatmul.mubr.bf16.gmra.mrb[4].mxu0 %v34_v54  ;;  %319 = vmatmul.mubr.bf16.gmra.mrb[4].mxu1 %v40_v55 }
  0x4b   :  { %298 = vmatprep.mubr.bf16.mxu0 %v37_v56 }
  0x52   :  { %299 = vmatmul.mubr.bf16.gmra.mrb[8].mxu0 %v36_v59 }
 0x115   :  { %v280_v3 = vpop.f32.mrb[0].mxu0  ;;  %v310_v4 = vpop.f32.mrb[0].mxu1 }
 0x116   :  { %v281_v5 = vadd.f32 %v280_v3, %v652_v1  ;;  %v282_v6 = vpop.f32.mrb[1].mxu0  ;;  %v311_v7 = vadd.f32 %v310_v4, %v652_v1  ;;  %v312_v8 = vpop.f32.mrb[1].mxu1 }
 0x117   :  { %v283_v9 = vadd.f32 %v282_v6, %v654_v2  ;;  %v284_v10 = vpop.f32.mrb[2].mxu0  ;;  %v313_v11 = vadd.f32 %v312_v8, %v654_v2  ;;  %v314_v12 = vpop.f32.mrb[2].mxu1 }
 0x118   :  { %v327_v13 = vmax.f32 %v281_v5, 0.0  ;;  %v285_v14 = vadd.f32 %v284_v10, %v652_v1  ;;  %v286_v15 = vpop.f32.mrb[3].mxu0  ;;  %v339_v16 = vmax.f32 %v311_v7, 0.0  ;;  %v315_v17 = vadd.f32 %v314_v12, %v652_v1  ;;  %v316_v18 = vpop.f32.mrb[3].mxu1 }
 0x119   :  { %v328_v19 = vmax.f32 %v283_v9, 0.0  ;;  %v287_v20 = vadd.f32 %v286_v15, %v654_v2  ;;  %v340_v21 = vmax.f32 %v313_v11, 0.0  ;;  %v317_v22 = vadd.f32 %v316_v18, %v654_v2 }
 0x11a   :  { %345 = vst [vmem:[%s731_s3] sm:$0xff] %v327_v13  ;;  %v329_v23 = vmax.f32 %v285_v14, 0.0  ;;  %357 = vst [vmem:[%s731_s3 + $0x60] sm:$0xff] %v339_v16  ;;  %v341_v24 = vmax.f32 %v315_v17, 0.0 }
 0x11b   :  { %346 = vst [vmem:[%s731_s3 + $0x8] sm:$0xff] %v328_v19  ;;  %v330_v25 = vmax.f32 %v287_v20, 0.0  ;;  %358 = vst [vmem:[%s731_s3 + $0x68] sm:$0xff] %v340_v21  ;;  %v342_v26 = vmax.f32 %v317_v22, 0.0 }
 0x11c   :  { %347 = vst [vmem:[%s731_s3 + $0x10] sm:$0xff] %v329_v23  ;;  %359 = vst [vmem:[%s731_s3 + $0x70] sm:$0xff] %v341_v24 }
 0x11d   :  { %348 = vst [vmem:[%s731_s3 + $0x18] sm:$0xff] %v330_v25  ;;  %v290_v27 = vpop.f32.mrb[4].mxu0  ;;  %360 = vst [vmem:[%s731_s3 + $0x78] sm:$0xff] %v342_v26  ;;  %v320_v28 = vpop.f32.mrb[4].mxu1 }
 0x11e   :  { %v291_v29 = vadd.f32 %v290_v27, %v652_v1  ;;  %v292_v30 = vpop.f32.mrb[5].mxu0  ;;  %v321_v31 = vadd.f32 %v320_v28, %v652_v1  ;;  %v322_v32 = vpop.f32.mrb[5].mxu1 }
 0x11f   :  { %v293_v33 = vadd.f32 %v292_v30, %v654_v2  ;;  %v294_v34 = vpop.f32.mrb[6].mxu0  ;;  %v323_v35 = vadd.f32 %v322_v32, %v654_v2  ;;  %v324_v36 = vpop.f32.mrb[6].mxu1 }
 0x120   :  { %v331_v37 = vmax.f32 %v291_v29, 0.0  ;;  %v295_v38 = vadd.f32 %v294_v34, %v652_v1  ;;  %v296_v39 = vpop.f32.mrb[7].mxu0  ;;  %v343_v40 = vmax.f32 %v321_v31, 0.0  ;;  %v325_v41 = vpop.f32.mrb[7].mxu1 }
 0x121   :  { %v332_v42 = vmax.f32 %v293_v33, 0.0  ;;  %v297_v43 = vadd.f32 %v296_v39, %v654_v2  ;;  %v344_v44 = vmax.f32 %v323_v35, 0.0 }
 0x122   :  { %349 = vst [vmem:[%s731_s3 + $0x20] sm:$0xff] %v331_v37  ;;  %v333_v45 = vmax.f32 %v295_v38, 0.0  ;;  %361 = vst [vmem:[%s731_s3 + $0x80] sm:$0xff] %v343_v40 }
 0x123   :  { %350 = vst [vmem:[%s731_s3 + $0x28] sm:$0xff] %v332_v42  ;;  %v334_v46 = vmax.f32 %v297_v43, 0.0  ;;  %362 = vst [vmem:[%s731_s3 + $0x88] sm:$0xff] %v344_v44 }
 0x124   :  { %351 = vst [vmem:[%s731_s3 + $0x30] sm:$0xff] %v333_v45 }
 0x125   :  { %352 = vst [vmem:[%s731_s3 + $0x38] sm:$0xff] %v334_v46  ;;  %v300_v47 = vpop.f32.mrb[8].mxu0 }
 0x126   :  { %v301_v48 = vadd.f32 %v300_v47, %v652_v1  ;;  %v302_v49 = vpop.f32.mrb[9].mxu0 }
 0x127   :  { %v303_v50 = vadd.f32 %v302_v49, %v654_v2  ;;  %v304_v51 = vpop.f32.mrb[10].mxu0 }
 0x128   :  { %v335_v52 = vmax.f32 %v301_v48, 0.0  ;;  %v305_v53 = vadd.f32 %v304_v51, %v652_v1  ;;  %v306_v54 = vpop.f32.mrb[11].mxu0 }
 0x129   :  { %v336_v55 = vmax.f32 %v303_v50, 0.0  ;;  %v307_v56 = vadd.f32 %v306_v54, %v654_v2 }
 0x12a   :  { %353 = vst [vmem:[%s731_s3 + $0x40] sm:$0xff] %v335_v52  ;;  %v337_v57 = vmax.f32 %v305_v53, 0.0 }
 0x12b   :  { %354 = vst [vmem:[%s731_s3 + $0x48] sm:$0xff] %v336_v55  ;;  %v338_v58 = vmax.f32 %v307_v56, 0.0 }
 0x12c   :  { %355 = vst [vmem:[%s731_s3 + $0x50] sm:$0xff] %v337_v57 }
 0x12d   :  { %356 = vst [vmem:[%s731_s3 + $0x58] sm:$0xff] %v338_v58 }

// kernel: crosscl_forward.16
= control target key start
LH: loop header
LB: loop body
LE: loop exit
PB: predicated region body
PF: predicated region fallthrough
CT: control target
= control target key end

     0   :  { %vm205_vm0 = vcmask 1041408   ;;  %s352_s1 = inlined_call_operand.vmem [shape: bf16[256,128], index: 1, kind: input, shape index: {}]   ;;  %s353_s0 = inlined_call_operand.vmem [shape: f32[2,256], index: 0, kind: input, shape index: {}]   ;;  %s354_s2 = inlined_call_operand.vmem [shape: f32[1,128], index: 2, kind: input, shape index: {}]   ;;  %s355_s3 = inlined_call_operand.vmem [shape: f32[2,128], index: 3, kind: output, shape index: {}]  }
   0x1   :  { %v257_v0 = vld [vmem:[%s352_s1 + $0x40] sm:$0xff]   ;;  %v259_v2 = vld [vmem:[%s352_s1 + $0x48] sm:$0xff]   ;;  %v261_v4 = vld [vmem:[%s352_s1 + $0x50] sm:$0xff]  }
   0x2   :  { %v258_v1 = vld [vmem:[%s352_s1] sm:$0xff]   ;;  %235 = vmatprep.subr.bf16.mxu0 %v257_v0  ;;  %v260_v3 = vld [vmem:[%s352_s1 + $0x8] sm:$0xff]   ;;  %v262_v5 = vld [vmem:[%s352_s1 + $0x10] sm:$0xff]  }
   0x3   :  { %236 = vmatpush3.bf16.msra.mxu0 %v258_v1  ;;  %v263_v6 = vld [vmem:[%s352_s1 + $0x58] sm:$0xff]   ;;  %v265_v8 = vld [vmem:[%s352_s1 + $0x60] sm:$0xff]   ;;  %v267_v10 = vld [vmem:[%s352_s1 + $0x68] sm:$0xff]  }
   0x4   :  { %237 = vmatprep.subr.bf16.mxu0 %v259_v2  ;;  %v264_v7 = vld [vmem:[%s352_s1 + $0x18] sm:$0xff]   ;;  %v266_v9 = vld [vmem:[%s352_s1 + $0x20] sm:$0xff]   ;;  %v268_v13 = vld [vmem:[%s352_s1 + $0x28] sm:$0xff]  }
   0x5   :  { %v217_v11 = vld.sshfl [vmem:[%s353_s0] sm:$0x33 pattern:$0x76325410]  ;;  %v269_v15 = vld [vmem:[%s352_s1 + $0x70] sm:$0xff]   ;;  %v271_v17 = vld [vmem:[%s352_s1 + $0x78] sm:$0xff]  }
   0x6   :  { %v24_v12 = vcombine.high %v217_v11, %v217_v11  ;;  %v270_v16 = vld [vmem:[%s352_s1 + $0x30] sm:$0xff]   ;;  %v272_v18 = vld [vmem:[%s352_s1 + $0x38] sm:$0xff]   ;;  %v27_v19 = vpack.c.bf16 %v217_v11, %v217_v11  ;;  %v218_v21 = vld [vmem:[%s354_s2] ss:$0 sm:$0xff] }
   0x7   :  { %238 = vmatpush3.bf16.msra.mxu0 %v260_v3 }
   0x8   :  { %239 = vmatprep.subr.bf16.mxu0 %v261_v4  ;;  %v28_v14 = vpack.c.bf16 %v24_v12, %v24_v12 }
   0xa   :  { %196 = vmatprep.mubr.bf16.mxu0 %v28_v14 }
   0xb   :  { %240 = vmatpush3.bf16.msra.mxu0 %v262_v5 }
   0xc   :  { %241 = vmatprep.subr.bf16.mxu0 %v263_v6 }
   0xf   :  { %242 = vmatpush3.bf16.msra.mxu0 %v264_v7 }
  0x10   :  { %243 = vmatprep.subr.bf16.mxu0 %v265_v8 }
  0x13   :  { %244 = vmatpush3.bf16.msra.mxu0 %v266_v9 }
  0x14   :  { %245 = vmatprep.subr.bf16.mxu0 %v267_v10 }
  0x17   :  { %246 = vmatpush3.bf16.msra.mxu0 %v268_v13 }
  0x18   :  { %247 = vmatprep.subr.bf16.mxu0 %v269_v15 }
  0x1b   :  { %248 = vmatpush3.bf16.msra.mxu0 %v270_v16 }
  0x1c   :  { %249 = vmatprep.subr.bf16.mxu0 %v271_v17 }
  0x1f   :  { %250 = vmatpush3.bf16.msra.mxu0 %v272_v18 }
  0x22   :  { %197 = vmatmul.mubr.bf16.vlgmr.msra.gmra.mrb[0].mxu0 %v27_v19 }
  0xf5   :  { %v251_v20 = vpop.f32.mrb[0].mxu0 }
  0xf6   :  { %v252_v22 = vpop.f32.mrb[1].mxu0 }
  0xf7   :  { %v253_v23 = vadd.f32 %v252_v22, %v251_v20  ;;  %v254_v24 = vpop.f32.mrb[2].mxu0 }
  0xf8   :  { %v255_v25 = vpop.f32.mrb[3].mxu0 }
  0xf9   :  { %v199_v26 = vadd.f32 %v253_v23, %v218_v21 }
  0xfb   :  { %v204_v27 = vmul.f32 %v199_v26, %v199_v26 }
  0xfd   :  { %v206_v28 = vsel %vm205_vm0, %v204_v27, 0.0 }
  0xfe   :  { %207 = vadd.xlane.f32.xlu0 %v206_v28 }
 0x18b   :  { %v208_v29 = vpop.xlane.xlu0 %207 }
 0x18c   :  { %v209_v30 = vmax.f32 %v208_v29, 1e-24 }
 0x18e   :  { %273 = vrsqrt.f32 %v209_v30 }
 0x198   :  { %v274_v31 = vpop.eup %273 }
 0x199   :  { %v211_v32 = vmul.f32 %v274_v31, %v199_v26 }
 0x19b   :  { %212 = vst [vmem:[%s355_s3] sm:$0x3] %v211_v32 }

// kernel: crosscl_forward.21
= control target key start
LH: loop header
LB: loop body
LE: loop exit
PB: predicated region body
PF: predicated region fallthrough
CT: control target
= control target key end

     0   :  { %v14_v0 = vlaneseq  ;;  %v48_v2 = vmov 1983009808   ;;  %vm21_vm0 = vcmask 1041408   ;;  %v49_v15 = vmov 269488144   ;;  %s66_s0 = inlined_call_operand.vmem [shape: f32[2,256], index: 0, kind: input, shape index: {}]   ;;  %s67_s1 = inlined_call_operand.vmem [shape: f32[2,256], index: 1, kind: output, shape index: {}]  }
   0x1   :  { %v8_v1 = vld [vmem:[%s66_s0] sm:$0xf]  ;;  %v12_v3 = vunpack.c.l.s4 %v48_v2  ;;  %v31_v16 = vunpack.c.l.s4 %v49_v15 }
   0x2   :  { %v15_v4 = vshrl.u32 %v14_v0, 7  ;;  %v9_v5 = vmul.f32 %v8_v1, %v8_v1 }
   0x3   :  { %v13_v6 = vunpack.c.0.s8 %v12_v3  ;;  %v32_v17 = vunpack.c.0.s8 %v31_v16 }
   0x5   :  { %v16_v7 = vsub.s32 %v13_v6, %v15_v4  ;;  %v35_v18 = vsub.s32 %v32_v17, %v15_v4 }
   0x7   :  { %v17_v8 = vrot.slane %v9_v5, %v16_v7 }
   0x9   :  { %v18_v9 = vcombine.high %v17_v8, %v17_v8  ;;  %v22_v10 = vsel %vm21_vm0, %v17_v8, 0.0 }
   0xb   :  { %v23_v11 = vsel %vm21_vm0, %v18_v9, 0.0 }
   0xc   :  { %v24_v12 = vadd.f32 %v23_v11, %v22_v10 }
   0xe   :  { %25 = vadd.xlane.f32.xlu0 %v24_v12 }
  0x9b   :  { %v26_v13 = vpop.xlane.xlu0 %25 }
  0x9c   :  { %v27_v14 = vmax.f32 %v26_v13, 1e-24 }
  0x9e   :  { %46 = vrsqrt.f32 %v27_v14 }
  0xa8   :  { %v47_v19 = vpop.eup %46 }
  0xa9   :  { %v36_v20 = vrot.slane %v47_v19, %v35_v18 }
  0xab   :  { %v38_v21 = vmul.f32 %v36_v20, %v8_v1 }
  0xad   :  { %39 = vst [vmem:[%s67_s1] sm:$0xf] %v38_v21 }

// kernel: crosscl_forward.20
= control target key start
LH: loop header
LB: loop body
LE: loop exit
PB: predicated region body
PF: predicated region fallthrough
CT: control target
= control target key end

     0   :  { %s540_s0 = inlined_call_operand.vmem [shape: s32[8], index: 0, kind: input, shape index: {}]   ;;  %s541_s1 = inlined_call_operand.vmem [shape: f32[2,36,256], index: 1, kind: input, shape index: {}]   ;;  %s542_s2 = inlined_call_operand.vmem [shape: f32[8,1,36], index: 2, kind: input, shape index: {}]   ;;  %s543_s3 = inlined_call_operand.vmem [shape: f32[8,1,1], index: 3, kind: input, shape index: {}]   ;;  %s544_s4 = inlined_call_operand.vmem [shape: f32[8,1,256], index: 4, kind: output, shape index: {}]  }
   0x1   :  { %s9_s17 = sshll.u32 %s540_s0, 4  ;;  %s10_s17 = int_to_ptr.vmem [resolvable:$true] %s9_s17 }
   0x2   :  { %s458_s18 = scalar_lea.vmem %s10_s17, 16  ;;  %p463_p1 = scmp.lt.s32.totalorder %s10_s17, %s10_s17 }
   0x3   :  { %p459_p0 = scmp.ne.s32.totalorder %s10_s17, %s458_s18  ;;  %p464_p2 = scmp.lt.s32.totalorder %s458_s18, %s458_s18 }
   0x5   :  { %p465_p3 = por %p464_p2, %p463_p1 }
   0x7   :  { %p466_p4 = pnand %p465_p3, %p459_p0 }
   0x9   :  { %469 = shalt.err (!%p466_p4)  }
   0xa   :  { %s480_s19 = smov [#allocation3]  }
   0xb   :  { %12 = dma.vmem_to_smem %s10_s17, 16, %s480_s19, [#allocation2] }
   0xc   :  { %474 = dma.done.wait [#allocation2], 16 }
   0xd   :  { %475 = vsyncadd [#allocation2], 4294967280 }
   0xe   :  { %14 = sfence }
   0xf   :  { %s512_s20 = smov 0  }
  0x10 LB: > { %s422_s0 = sadd.s32 4294967295, %s478_s20   ;;  %p426_p5 = scmp.ge.s32.totalorder %s478_s20, 1  ;;  %s478_s20 = sphi %s512_s20, %s20_s20  }
  0x11   : > { %p164_p6 = scmp.lt.s32.totalorder %s478_s20, 9 }
  0x13   : > { %p165_p7 = pnand %p426_p5, %p164_p6 }
  0x14   : > { %s194_s21 = sld [smem:[#allocation3 + %s422_s0]] (!%p165_p7)  ;;  %p201_p8 = scmp.lt.s32.totalorder (!%p165_p7), %s422_s0, 7  ;;  %v481_v0 = vmov (!%p165_p7), 0.0   ;;  %v482_v1 = vmov (!%p165_p7), 0   ;;  %vm227_vm0 = vcmask (!%p165_p7), 1043456   ;;  %vm223_vm1 = vcmask (!%p165_p7), 293888  }
  0x15   : > { %168 = sbr.rel (%p165_p7) target bundleno = 429 (0x1ad), region = 32  ;;  %298 = vmatprep.mubr.f32.mxu0 (!%p165_p7), %v481_v0  ;;  %455 = vset.pattern.permute.xlu0 (!%p165_p7), %v482_v1  ;;  %v310_v18 = vlaneseq (!%p165_p7)  ;;  %vm318_vm2 = vcmask (!%p165_p7), 1040384   ;;  %v483_v34 = vmov (!%p165_p7), 1966171168  }
  0x16   : > { %v332_v35 = vunpack.c.l.s4 (!%p165_p7), %v483_v34 }
  0x17   : > { %v311_v19 = vshrl.u32 (!%p165_p7), %v310_v18, 7  ;;  %vm348_vm3 = vcmp.lt.s32.totalorder (!%p165_p7), %v310_v18, 256 }
  0x18   : > { %v333_v36 = vunpack.c.0.s8 (!%p165_p7), %v332_v35 }
  0x19   : > { %v312_v20 = vsub.s32 (!%p165_p7), 0, %v311_v19 }
  0x1a   : > { %p195_p9 = scmp.lt.s32.totalorder (!%p165_p7), %s194_s21, 1  ;;  %v336_v38 = vsub.s32 (!%p165_p7), %v333_v36, %v311_v19 }
  0x1c   : > { %s546_s0 = smov (!%p201_p8, %s422_s0), 7  ;;  %s548_s21 = smov (!%p195_p9, %s194_s21), 1 }
  0x1d   : > { %s206_s24 = scalar_lea.vmem %s543_s3, %s546_s0  ;;  %s442_s25 = smul.u32 80, %s548_s21 }
  0x1e   : > { %v222_v2 = vld [vmem:[%s206_s24] sm:$0x1]  ;;  %s203_s5 = scalar_lea.vmem %s542_s2, %s546_s0  ;;  %s428_s6 = sshll.u32 %s546_s0, 1 }
  0x1f   : > { %307 = vperm.xlu0 %455, %v222_v2   ;;  %s199_s28 = scalar_lea.vmem %s541_s1, %s442_s25  ;;  %v221_v17 = vld [vmem:[%s203_s5] sm:$0x1]  ;;  %s210_s9 = scalar_lea.vmem %s544_s4, %s428_s6 }
  0x20   : > { %v212_v3 = vld [vmem:[%s199_s28 + $0x8] sm:$0xff]  ;;  %v214_v4 = vld [vmem:[%s199_s28 + $0x18] sm:$0xff]  ;;  %v211_v5 = vld [vmem:[%s199_s28] sm:$0xff] }
  0x21   : > { %v434_v6 = vpack.c.bf16 %v214_v4, %v212_v3  ;;  %v213_v7 = vld [vmem:[%s199_s28 + $0x10] sm:$0xff]  ;;  %v216_v8 = vld [vmem:[%s199_s28 + $0x28] sm:$0xff]  ;;  %v218_v9 = vld [vmem:[%s199_s28 + $0x38] sm:$0xff] }
  0x22   : > { %v436_v10 = vpack.c.bf16 %v213_v7, %v211_v5  ;;  %v438_v11 = vpack.c.bf16 %v218_v9, %v216_v8  ;;  %v215_v12 = vld [vmem:[%s199_s28 + $0x20] sm:$0xff]  ;;  %v217_v13 = vld [vmem:[%s199_s28 + $0x30] sm:$0xff]  ;;  %v220_v15 = vld [vmem:[%s199_s28 + $0x48] sm:$0xf] }
  0x23   : > { %435 = vmatprep.subr.bf16.mxu0 %v434_v6  ;;  %v440_v14 = vpack.c.bf16 %v217_v13, %v215_v12  ;;  %v219_v16 = vld [vmem:[%s199_s28 + $0x40] sm:$0xf] }
  0x24   : > { %437 = vmatpush1.bf16.msra.mxu0 %v436_v10 }
  0x25   : > { %439 = vmatprep.subr.bf16.mxu0 %v438_v11 }
  0x28   : > { %441 = vmatpush1.bf16.msra.mxu0 %v440_v14 }
  0x29   : > { %429 = vmatprep.subr.msk.mxu0 %vm227_vm0, %v220_v15 }
  0x2c   : > { %430 = vmatpush1.msk.msra.mxu0 %vm227_vm0, %v219_v16 }
  0x2d   : > { %431 = vmatmul.mubr.msk.f32.vlgmr.msra.gmra.mrb[0].mxu0 %vm223_vm1, %v221_v17 }
  0x9e   : > { %v308_v21 = vpop.permute.xlu0 %307 }
  0x9f   : > { %v313_v22 = vrot.slane %v308_v21, %v312_v20 }
 0x100   : > { %v300_v23 = vpop.f32.mrb[0].mxu0 }
 0x101   : > { %v314_v24 = vmul.f32 %v313_v22, %v300_v23  ;;  %v302_v25 = vpop.f32.mrb[1].mxu0 }
 0x102   : > { %v315_v26 = vmul.f32 %v313_v22, %v302_v25 }
 0x103   : > { %v316_v27 = vmul.f32 %v314_v24, %v314_v24 }
 0x104   : > { %v317_v28 = vmul.f32 %v315_v26, %v315_v26 }
 0x105   : > { %v319_v29 = vsel %vm318_vm2, %v316_v27, 0.0 }
 0x106   : > { %v320_v30 = vsel %vm318_vm2, %v317_v28, 0.0 }
 0x107   : > { %v321_v31 = vadd.f32 %v320_v30, %v319_v29 }
 0x109   : > { %322 = vadd.xlane.f32.xlu0 %v321_v31 }
 0x196   : > { %v323_v32 = vpop.xlane.xlu0 %322 }
 0x197   : > { %v324_v33 = vmax.f32 %v323_v32, 1e-24 }
 0x199   : > { %456 = vrsqrt.f32 %v324_v33 }
 0x1a3   : > { %v457_v37 = vpop.eup %456 }
 0x1a4   : > { %v326_v39 = vmul.f32 %v457_v37, %v314_v24  ;;  %v327_v40 = vmul.f32 %v457_v37, %v315_v26 }
 0x1a6   : > { %v330_v41 = vcombine.low %v326_v39, %v327_v40 }
 0x1a8   : > { %v337_v42 = vrot.slane %v330_v41, %v336_v38 }
 0x1aa   : > { %v344_v43 = vrot.slane %v337_v42, %v336_v38 }
 0x1ac   : > { %350 = vst.msk [vmem:[%s210_s9] sm:$0x3] %vm348_vm3, %v344_v43 }
 0x1ad PF: > { %s20_s20 = sadd.s32 1, %s478_s20  }
 0x1ae   : > { %p17_p10 = scmp.ge.s32.totalorder %s20_s20, 10  }
 0x1b0   :  { %19 = sbr.rel (!%p17_p10) target bundleno = 16 (0x10), region = 68 }

// kernel: crosscl_forward.22
= control target key start
LH: loop header
LB: loop body
LE: loop exit
PB: predicated region body
PF: predicated region fallthrough
CT: control target
= control target key end

     0   :  { %vm41_vm0 = vcmask 7168   ;;  %vm221_vm1 = vcmask 15360   ;;  %s395_s2 = inlined_call_operand.vmem [shape: bf16[256,2], index: 2, kind: input, shape index: {}]   ;;  %s396_s0 = inlined_call_operand.vmem [shape: f32[16,256], index: 0, kind: input, shape index: {}]   ;;  %s397_s1 = inlined_call_operand.vmem [shape: f32[16,256], index: 1, kind: input, shape index: {}]   ;;  %s398_s3 = inlined_call_operand.vmem [shape: f32[16,1], index: 3, kind: output, shape index: {0}]   ;;  %s399_s4 = inlined_call_operand.vmem [shape: f32[16,2], index: 4, kind: output, shape index: {1}]  }
   0x1   :  { %v270_v0 = vld [vmem:[%s395_s2 + $0x40] sm:$0xff]   ;;  %v272_v2 = vld [vmem:[%s395_s2 + $0x48] sm:$0xff]   ;;  %v274_v4 = vld [vmem:[%s395_s2 + $0x50] sm:$0xff]  }
   0x2   :  { %v271_v1 = vld [vmem:[%s395_s2] sm:$0xff]   ;;  %248 = vmatprep.subr.bf16.mxu0 %v270_v0  ;;  %v273_v3 = vld [vmem:[%s395_s2 + $0x8] sm:$0xff]   ;;  %v275_v5 = vld [vmem:[%s395_s2 + $0x10] sm:$0xff]  }
   0x3   :  { %249 = vmatpush3.bf16.msra.mxu0 %v271_v1  ;;  %v276_v6 = vld [vmem:[%s395_s2 + $0x58] sm:$0xff]   ;;  %v278_v8 = vld [vmem:[%s395_s2 + $0x60] sm:$0xff]   ;;  %v280_v10 = vld [vmem:[%s395_s2 + $0x68] sm:$0xff]  }
   0x4   :  { %250 = vmatprep.subr.bf16.mxu0 %v272_v2  ;;  %v277_v7 = vld [vmem:[%s395_s2 + $0x18] sm:$0xff]   ;;  %v279_v9 = vld [vmem:[%s395_s2 + $0x20] sm:$0xff]   ;;  %v45_v11 = vld [vmem:[%s396_s0 + $0x8] sm:$0xff] }
   0x5   :  { %v47_v12 = vld [vmem:[%s396_s0 + $0x18] sm:$0xff]  ;;  %v44_v14 = vld [vmem:[%s396_s0] sm:$0xff]  ;;  %v26_v16 = vld [vmem:[%s397_s1 + $0x8] sm:$0xff] }
   0x6   :  { %v49_v13 = vpack.c.bf16 %v47_v12, %v45_v11  ;;  %v25_v15 = vld [vmem:[%s397_s1] sm:$0xff]  ;;  %v46_v17 = vld [vmem:[%s396_s0 + $0x10] sm:$0xff]  ;;  %v30_v19 = vmul.f32 %v45_v11, %v26_v16  ;;  %v28_v21 = vld [vmem:[%s397_s1 + $0x18] sm:$0xff] }
   0x7   :  { %251 = vmatpush3.bf16.msra.mxu0 %v273_v3  ;;  %v29_v18 = vmul.f32 %v44_v14, %v25_v15  ;;  %v27_v20 = vld [vmem:[%s397_s1 + $0x10] sm:$0xff]  ;;  %v281_v22 = vld [vmem:[%s395_s2 + $0x28] sm:$0xff]   ;;  %v32_v24 = vmul.f32 %v47_v12, %v28_v21  ;;  %v284_v29 = vld [vmem:[%s395_s2 + $0x78] sm:$0xff]   ;;  %v48_v31 = vpack.c.bf16 %v46_v17, %v44_v14 }
   0x8   :  { %252 = vmatprep.subr.bf16.mxu0 %v274_v4  ;;  %210 = vmatprep.mubr.bf16.mxu0 %v49_v13  ;;  %v31_v23 = vmul.f32 %v46_v17, %v27_v20  ;;  %v282_v25 = vld [vmem:[%s395_s2 + $0x70] sm:$0xff]   ;;  %v285_v30 = vld [vmem:[%s395_s2 + $0x38] sm:$0xff]  }
   0x9   :  { %v33_v26 = vadd.f32 %v30_v19, %v29_v18  ;;  %v283_v28 = vld [vmem:[%s395_s2 + $0x30] sm:$0xff]  }
   0xa   :  { %v36_v27 = vadd.f32 %v32_v24, %v31_v23 }
   0xb   :  { %253 = vmatpush3.bf16.msra.mxu0 %v275_v5  ;;  %34 = vadd.xlane.f32.xlu0 %v33_v26 }
   0xc   :  { %254 = vmatprep.subr.bf16.mxu0 %v276_v6 }
   0xf   :  { %255 = vmatpush3.bf16.msra.mxu0 %v277_v7  ;;  %37 = vadd.xlane.f32.xlu0 %v36_v27 }
  0x10   :  { %256 = vmatprep.subr.bf16.mxu0 %v278_v8 }
  0x13   :  { %257 = vmatpush3.bf16.msra.mxu0 %v279_v9 }
  0x14   :  { %258 = vmatprep.subr.bf16.mxu0 %v280_v10 }
  0x17   :  { %259 = vmatpush3.bf16.msra.mxu0 %v281_v22 }
  0x18   :  { %260 = vmatprep.subr.bf16.mxu0 %v282_v25 }
  0x1b   :  { %261 = vmatpush3.bf16.msra.mxu0 %v283_v28 }
  0x1c   :  { %262 = vmatprep.subr.bf16.mxu0 %v284_v29 }
  0x1f   :  { %263 = vmatpush3.bf16.msra.mxu0 %v285_v30 }
  0x22   :  { %211 = vmatmul.mubr.bf16.vlgmr.msra.gmra.mrb[0].mxu0 %v48_v31 }
  0x98   :  { %v35_v32 = vpop.xlane.xlu0 %34 }
  0x99   :  { %v39_v33 = vmul.f32 14.285714, %v35_v32 }
  0x9b   :  { %42 = vst.msk [vmem:[%s398_s3] sm:$0xff] %vm41_vm0, %v39_v33 }
  0x9c   :  { %v38_v34 = vpop.xlane.xlu0 %37 }
  0x9d   :  { %v40_v35 = vmul.f32 14.285714, %v38_v34 }
  0x9f   :  { %43 = vst.msk [vmem:[%s398_s3 + $0x8] sm:$0xff] %vm41_vm0, %v40_v35 }
  0xf5   :  { %v264_v36 = vpop.f32.mrb[0].mxu0 }
  0xf6   :  { %v265_v37 = vpop.f32.mrb[1].mxu0 }
  0xf7   :  { %v266_v38 = vadd.f32 %v265_v37, %v264_v36  ;;  %v267_v39 = vpop.f32.mrb[2].mxu0 }
  0xf8   :  { %v268_v40 = vpop.f32.mrb[3].mxu0 }
  0xf9   :  { %v219_v41 = vmul.f32 14.285714, %v266_v38  ;;  %v269_v42 = vadd.f32 %v268_v40, %v267_v39 }
  0xfb   :  { %222 = vst.msk [vmem:[%s399_s4] sm:$0xff] %vm221_vm1, %v219_v41  ;;  %v220_v43 = vmul.f32 14.285714, %v269_v42 }
  0xfd   :  { %223 = vst.msk [vmem:[%s399_s4 + $0x8] sm:$0xff] %vm221_vm1, %v220_v43 }

// kernel: crosscl_forward.25
= control target key start
LH: loop header
LB: loop body
LE: loop exit
PB: predicated region body
PF: predicated region fallthrough
CT: control target
= control target key end

     0   :  { %vm41_vm0 = vcmask 7168   ;;  %vm221_vm1 = vcmask 261120   ;;  %s395_s2 = inlined_call_operand.vmem [shape: bf16[256,32], index: 2, kind: input, shape index: {}]   ;;  %s396_s0 = inlined_call_operand.vmem [shape: f32[16,256], index: 0, kind: input, shape index: {}]   ;;  %s397_s1 = inlined_call_operand.vmem [shape: f32[16,256], index: 1, kind: input, shape index: {}]   ;;  %s398_s3 = inlined_call_operand.vmem [shape: f32[16,1], index: 3, kind: output, shape index: {0}]   ;;  %s399_s4 = inlined_call_operand.vmem [shape: f32[16,32], index: 4, kind: output, shape index: {1}]  }
   0x1   :  { %v270_v0 = vld [vmem:[%s395_s2 + $0x40] sm:$0xff]   ;;  %v272_v2 = vld [vmem:[%s395_s2 + $0x48] sm:$0xff]   ;;  %v274_v4 = vld [vmem:[%s395_s2 + $0x50] sm:$0xff]  }
   0x2   :  { %v271_v1 = vld [vmem:[%s395_s2] sm:$0xff]   ;;  %248 = vmatprep.subr.bf16.mxu0 %v270_v0  ;;  %v273_v3 = vld [vmem:[%s395_s2 + $0x8] sm:$0xff]   ;;  %v275_v5 = vld [vmem:[%s395_s2 + $0x10] sm:$0xff]  }
   0x3   :  { %249 = vmatpush3.bf16.msra.mxu0 %v271_v1  ;;  %v276_v6 = vld [vmem:[%s395_s2 + $0x58] sm:$0xff]   ;;  %v278_v8 = vld [vmem:[%s395_s2 + $0x60] sm:$0xff]   ;;  %v280_v10 = vld [vmem:[%s395_s2 + $0x68] sm:$0xff]  }
   0x4   :  { %250 = vmatprep.subr.bf16.mxu0 %v272_v2  ;;  %v277_v7 = vld [vmem:[%s395_s2 + $0x18] sm:$0xff]   ;;  %v279_v9 = vld [vmem:[%s395_s2 + $0x20] sm:$0xff]   ;;  %v45_v11 = vld [vmem:[%s396_s0 + $0x8] sm:$0xff] }
   0x5   :  { %v47_v12 = vld [vmem:[%s396_s0 + $0x18] sm:$0xff]  ;;  %v44_v14 = vld [vmem:[%s396_s0] sm:$0xff]  ;;  %v26_v16 = vld [vmem:[%s397_s1 + $0x8] sm:$0xff] }
   0x6   :  { %v49_v13 = vpack.c.bf16 %v47_v12, %v45_v11  ;;  %v25_v15 = vld [vmem:[%s397_s1] sm:$0xff]  ;;  %v46_v17 = vld [vmem:[%s396_s0 + $0x10] sm:$0xff]  ;;  %v30_v19 = vmul.f32 %v45_v11, %v26_v16  ;;  %v28_v21 = vld [vmem:[%s397_s1 + $0x18] sm:$0xff] }
   0x7   :  { %251 = vmatpush3.bf16.msra.mxu0 %v273_v3  ;;  %v29_v18 = vmul.f32 %v44_v14, %v25_v15  ;;  %v27_v20 = vld [vmem:[%s397_s1 + $0x10] sm:$0xff]  ;;  %v281_v22 = vld [vmem:[%s395_s2 + $0x28] sm:$0xff]   ;;  %v32_v24 = vmul.f32 %v47_v12, %v28_v21  ;;  %v284_v29 = vld [vmem:[%s395_s2 + $0x78] sm:$0xff]   ;;  %v48_v31 = vpack.c.bf16 %v46_v17, %v44_v14 }
   0x8   :  { %252 = vmatprep.subr.bf16.mxu0 %v274_v4  ;;  %210 = vmatprep.mubr.bf16.mxu0 %v49_v13  ;;  %v31_v23 = vmul.f32 %v46_v17, %v27_v20  ;;  %v282_v25 = vld [vmem:[%s395_s2 + $0x70] sm:$0xff]   ;;  %v285_v30 = vld [vmem:[%s395_s2 + $0x38] sm:$0xff]  }
   0x9   :  { %v33_v26 = vadd.f32 %v30_v19, %v29_v18  ;;  %v283_v28 = vld [vmem:[%s395_s2 + $0x30] sm:$0xff]  }
   0xa   :  { %v36_v27 = vadd.f32 %v32_v24, %v31_v23 }
   0xb   :  { %253 = vmatpush3.bf16.msra.mxu0 %v275_v5  ;;  %34 = vadd.xlane.f32.xlu0 %v33_v26 }
   0xc   :  { %254 = vmatprep.subr.bf16.mxu0 %v276_v6 }
   0xf   :  { %255 = vmatpush3.bf16.msra.mxu0 %v277_v7  ;;  %37 = vadd.xlane.f32.xlu0 %v36_v27 }
  0x10   :  { %256 = vmatprep.subr.bf16.mxu0 %v278_v8 }
  0x13   :  { %257 = vmatpush3.bf16.msra.mxu0 %v279_v9 }
  0x14   :  { %258 = vmatprep.subr.bf16.mxu0 %v280_v10 }
  0x17   :  { %259 = vmatpush3.bf16.msra.mxu0 %v281_v22 }
  0x18   :  { %260 = vmatprep.subr.bf16.mxu0 %v282_v25 }
  0x1b   :  { %261 = vmatpush3.bf16.msra.mxu0 %v283_v28 }
  0x1c   :  { %262 = vmatprep.subr.bf16.mxu0 %v284_v29 }
  0x1f   :  { %263 = vmatpush3.bf16.msra.mxu0 %v285_v30 }
  0x22   :  { %211 = vmatmul.mubr.bf16.vlgmr.msra.gmra.mrb[0].mxu0 %v48_v31 }
  0x98   :  { %v35_v32 = vpop.xlane.xlu0 %34 }
  0x99   :  { %v39_v33 = vmul.f32 14.285714, %v35_v32 }
  0x9b   :  { %42 = vst.msk [vmem:[%s398_s3] sm:$0xff] %vm41_vm0, %v39_v33 }
  0x9c   :  { %v38_v34 = vpop.xlane.xlu0 %37 }
  0x9d   :  { %v40_v35 = vmul.f32 14.285714, %v38_v34 }
  0x9f   :  { %43 = vst.msk [vmem:[%s398_s3 + $0x8] sm:$0xff] %vm41_vm0, %v40_v35 }
  0xf5   :  { %v264_v36 = vpop.f32.mrb[0].mxu0 }
  0xf6   :  { %v265_v37 = vpop.f32.mrb[1].mxu0 }
  0xf7   :  { %v266_v38 = vadd.f32 %v265_v37, %v264_v36  ;;  %v267_v39 = vpop.f32.mrb[2].mxu0 }
  0xf8   :  { %v268_v40 = vpop.f32.mrb[3].mxu0 }
  0xf9   :  { %v219_v41 = vmul.f32 14.285714, %v266_v38  ;;  %v269_v42 = vadd.f32 %v268_v40, %v267_v39 }
  0xfb   :  { %222 = vst.msk [vmem:[%s399_s4] sm:$0xff] %vm221_vm1, %v219_v41  ;;  %v220_v43 = vmul.f32 14.285714, %v269_v42 }
  0xfd   :  { %223 = vst.msk [vmem:[%s399_s4 + $0x8] sm:$0xff] %vm221_vm1, %v220_v43 }

// kernel: crosscl_forward.17
= control target key start
LH: loop header
LB: loop body
LE: loop exit
PB: predicated region body
PF: predicated region fallthrough
CT: control target
= control target key end

     0   :  { %s841_s15 = smov 0   ;;  %s843_s16 = smov 0   ;;  %s958_s0 = inlined_call_operand.vmem [shape: f32[2,128], index: 0, kind: input, shape index: {}]   ;;  %s959_s1 = inlined_call_operand.vmem [shape: f32[2,128], index: 1, kind: input, shape index: {}]   ;;  %s960_s2 = inlined_call_operand.vmem [shape: bf16[128,512], index: 2, kind: input, shape index: {}]   ;;  %s961_s3 = inlined_call_operand.vmem [shape: f32[2,1], index: 3, kind: output, shape index: {0}]   ;;  %s962_s4 = inlined_call_operand.vmem [shape: f32[2,512], index: 4, kind: output, shape index: {1}]  }
   0x1   :  { %s845_s17 = smov 0   ;;  %s847_s18 = smov 0  }
   0x2   :  { %s849_s19 = smov 0  }
   0x3 LB: > { %s24_s20 = sadd.s32 1, %s809_s18  ;;  %p93_p1 = scmp.ne.s32.totalorder %s801_s16, %s797_s15  ;;  %s813_s19 = sphi %s849_s19, %s15_s19   ;;  %s809_s18 = sphi %s847_s18, %s966_s18   ;;  %s805_s17 = sphi %s845_s17, %s965_s17   ;;  %s801_s16 = sphi %s843_s16, %s964_s16   ;;  %s797_s15 = sphi %s841_s15, %s963_s15  }
   0x4   : > { %p25_p0 = scmp.ge.s32.totalorder %s24_s20, 2  ;;  %p94_p2 = scmp.eq.s32.totalorder %s813_s19, 0 }
   0x5   : > { %s86_s22 = sadd.s32 1, %s801_s16  ;;  %p680_p5 = scmp.ge.s32.totalorder %s813_s19, 2 }
   0x6   : > { %s968_s20 = smov (%p25_p0, %s24_s20), 0  ;;  %p95_p3 = por %p94_p2, %p93_p1 }
   0x7   : > { %s83_s21 = ssub.s32 %s809_s18, %s968_s20  ;;  %187 = sbr.rel (%p680_p5) target bundleno = 26 (0x1a), region = 24 }
   0x8   : > { %p84_p4 = scmp.eq.s32.totalorder %s83_s21, 0 }
   0xa   : > { %s876_s23 = scalar_select %p84_p4, %s801_s16, %s86_s22  }
   0xe   : > { %190 = sbr.rel (!%p95_p3) target bundleno = 26 (0x1a), region = 28  ;;  %s192_s24 = sand.u32 (%p95_p3), 1, %s801_s16  }
   0xf   : > { %s709_s25 = sshll.u32 (%p95_p3), %s809_s18, 3  ;;  %s681_s26 = sshll.u32 (%p95_p3), %s192_s24, 7 }
  0x10   : > { %s884_s29 = scalar_lea.vmem (%p95_p3), %s960_s2, %s709_s25  ;;  %s194_s30 = scalar_lea.vmem (%p95_p3), [#allocation2], %s681_s26 }
  0x11   : > { %v255_v0 = vld [vmem:[%s884_s29] sm:$0xff] (%p95_p3)  ;;  %v257_v1 = vld [vmem:[%s884_s29 + $0x10] sm:$0xff] (%p95_p3) }
  0x12   : > { %v259_v2 = vld [vmem:[%s884_s29 + $0x20] sm:$0xff] (%p95_p3)  ;;  %256 = vst [vmem:[%s194_s30] sm:$0xff] (%p95_p3), %v255_v0  ;;  %258 = vst [vmem:[%s194_s30 + $0x8] sm:$0xff] (%p95_p3), %v257_v1  ;;  %v261_v3 = vld [vmem:[%s884_s29 + $0x30] sm:$0xff] (%p95_p3) }
  0x13   : > { %260 = vst [vmem:[%s194_s30 + $0x10] sm:$0xff] (%p95_p3), %v259_v2  ;;  %v263_v4 = vld [vmem:[%s884_s29 + $0x40] sm:$0xff] (%p95_p3)  ;;  %v265_v5 = vld [vmem:[%s884_s29 + $0x50] sm:$0xff] (%p95_p3)  ;;  %262 = vst [vmem:[%s194_s30 + $0x18] sm:$0xff] (%p95_p3), %v261_v3 }
  0x14   : > { %264 = vst [vmem:[%s194_s30 + $0x20] sm:$0xff] (%p95_p3), %v263_v4  ;;  %266 = vst [vmem:[%s194_s30 + $0x28] sm:$0xff] (%p95_p3), %v265_v5  ;;  %v267_v6 = vld [vmem:[%s884_s29 + $0x60] sm:$0xff] (%p95_p3)  ;;  %v269_v7 = vld [vmem:[%s884_s29 + $0x70] sm:$0xff] (%p95_p3) }
  0x15   : > { %v271_v8 = vld [vmem:[%s884_s29 + $0x80] sm:$0xff]  ;;  %268 = vst [vmem:[%s194_s30 + $0x30] sm:$0xff] %v267_v6  ;;  %270 = vst [vmem:[%s194_s30 + $0x38] sm:$0xff] %v269_v7  ;;  %v273_v9 = vld [vmem:[%s884_s29 + $0x90] sm:$0xff] }
  0x16   : > { %272 = vst [vmem:[%s194_s30 + $0x40] sm:$0xff] %v271_v8  ;;  %v275_v10 = vld [vmem:[%s884_s29 + $0xa0] sm:$0xff]  ;;  %v277_v11 = vld [vmem:[%s884_s29 + $0xb0] sm:$0xff]  ;;  %274 = vst [vmem:[%s194_s30 + $0x48] sm:$0xff] %v273_v9 }
  0x17   : > { %276 = vst [vmem:[%s194_s30 + $0x50] sm:$0xff] %v275_v10  ;;  %278 = vst [vmem:[%s194_s30 + $0x58] sm:$0xff] %v277_v11  ;;  %v279_v12 = vld [vmem:[%s884_s29 + $0xc0] sm:$0xff]  ;;  %v281_v13 = vld [vmem:[%s884_s29 + $0xd0] sm:$0xff] }
  0x18   : > { %v283_v14 = vld [vmem:[%s884_s29 + $0xe0] sm:$0xff]  ;;  %280 = vst [vmem:[%s194_s30 + $0x60] sm:$0xff] %v279_v12  ;;  %282 = vst [vmem:[%s194_s30 + $0x68] sm:$0xff] %v281_v13  ;;  %v285_v15 = vld [vmem:[%s884_s29 + $0xf0] sm:$0xff] }
  0x19   : > { %284 = vst [vmem:[%s194_s30 + $0x70] sm:$0xff] %v283_v14  ;;  %286 = vst [vmem:[%s194_s30 + $0x78] sm:$0xff] %v285_v15 }
  0x1a PF: > { %p684_p6 = scmp.ge.s32.totalorder %s813_s19, 1  ;;  %p291_p7 = scmp.lt.s32.totalorder %s813_s19, 3 }
  0x1c   : > { %p292_p8 = pnand %p684_p6, %p291_p7 }
  0x1d   : > { %s298_s5 = sand.u32 (!%p292_p8), 1, %s797_s15   ;;  %s686_s6 = sshll.u32 (!%p292_p8), %s805_s17, 1 }
  0x1e   : > { %295 = sbr.rel (%p292_p8) target bundleno = 439 (0x1b7), region = 66  ;;  %s685_s7 = sshll.u32 (!%p292_p8), %s298_s5, 7 }
  0x1f   : > { %p355_p9 = scmp.lt.s32.totalorder (!%p292_p8), %s686_s6, 3  ;;  %s911_s12 = scalar_lea.vmem (!%p292_p8), [#allocation2], %s685_s7 }
  0x20   : > { %p688_p10 = scmp.ne.s32.totalorder (!%p292_p8), %s805_s17, 0 }
  0x25   : > { %s970_s6 = smov (!%p355_p9, %s686_s6), 3  ;;  %366 = sbr.rel (%p688_p10) target bundleno = 188 (0xbc), region = 74 }
  0x26   : > { %s687_s8 = sshll.u32 %s970_s6, 1  ;;  %v367_v16 = vld [vmem:[%s958_s0] sm:$0x3] (!%p688_p10)  ;;  %vm370_vm0 = vcmask (!%p688_p10), 1041408   ;;  %vm375_vm1 = vcmask (!%p688_p10), 1024  }
  0x27   : > { %s909_s11 = scalar_lea.vmem %s962_s4, %s687_s8  ;;  %v368_v17 = vld [vmem:[%s959_s1] sm:$0x3] (!%p688_p10) }
  0x28   : > { %v369_v18 = vmul.f32 (!%p688_p10), %v368_v17, %v367_v16 }
  0x2a   : > { %v371_v19 = vsel (!%p688_p10), %vm370_vm0, %v369_v18, 0.0 }
  0x2b   : > { %372 = vadd.xlane.f32.xlu0 (!%p688_p10), %v371_v19 }
  0xb8   : > { %v373_v20 = vpop.xlane.xlu0 %372 }
  0xb9   : > { %v374_v21 = vmul.f32 14.285714, %v373_v20 }
  0xbb   : > { %376 = vst.msk [vmem:[%s961_s3] sm:$0x3] %vm375_vm1, %v374_v21 }
  0xbc PF: > { %v751_v22 = vld [vmem:[%s911_s12 + $0x4] ss:$8 sps:$4 sm:$0xff]   ;;  %v753_v23 = vld [vmem:[%s911_s12] ss:$8 sps:$4 sm:$0xff]   ;;  %v815_v24 = vmov 0  }
  0xbd   : > { %507 = vmatprep.mubr.bf16.mxu0 %v815_v24  ;;  %475 = vmatprep.subr.bf16.mxu0 %v751_v22  ;;  %v754_v25 = vld [vmem:[%s911_s12 + $0x14] ss:$8 sps:$4 sm:$0xff]   ;;  %v756_v26 = vld [vmem:[%s911_s12 + $0x10] ss:$8 sps:$4 sm:$0xff]   ;;  %v757_v27 = vld [vmem:[%s911_s12 + $0x24] ss:$8 sps:$4 sm:$0xff]  }
  0xbe   : > { %476 = vmatpush1.bf16.msra.mxu0 %v753_v23  ;;  %v759_v28 = vld [vmem:[%s911_s12 + $0x20] ss:$8 sps:$4 sm:$0xff]   ;;  %v760_v29 = vld [vmem:[%s911_s12 + $0x34] ss:$8 sps:$4 sm:$0xff]   ;;  %v762_v30 = vld [vmem:[%s911_s12 + $0x30] ss:$8 sps:$4 sm:$0xff]  }
  0xbf   : > { %477 = vmatprep.subr.bf16.mxu0 %v754_v25  ;;  %v763_v31 = vld [vmem:[%s911_s12 + $0x44] ss:$8 sps:$4 sm:$0xff]   ;;  %v765_v32 = vld [vmem:[%s911_s12 + $0x40] ss:$8 sps:$4 sm:$0xff]   ;;  %v766_v33 = vld [vmem:[%s911_s12 + $0x54] ss:$8 sps:$4 sm:$0xff]  }
  0xc0   : > { %v768_v34 = vld [vmem:[%s911_s12 + $0x50] ss:$8 sps:$4 sm:$0xff]   ;;  %v769_v35 = vld [vmem:[%s911_s12 + $0x64] ss:$8 sps:$4 sm:$0xff]   ;;  %v771_v36 = vld [vmem:[%s911_s12 + $0x60] ss:$8 sps:$4 sm:$0xff]  }
  0xc1   : > { %v772_v37 = vld [vmem:[%s911_s12 + $0x74] ss:$8 sps:$4 sm:$0xff]   ;;  %v774_v38 = vld [vmem:[%s911_s12 + $0x70] ss:$8 sps:$4 sm:$0xff]   ;;  %v377_v39 = vld [vmem:[%s958_s0] sm:$0x3] }
  0xc2   : > { %478 = vmatpush1.bf16.msra.mxu0 %v756_v26  ;;  %v378_v40 = vpack.c.bf16 %v377_v39, %v377_v39 }
  0xc3   : > { %479 = vmatprep.subr.bf16.mxu0 %v757_v27 }
  0xc6   : > { %480 = vmatpush1.bf16.msra.mxu0 %v759_v28 }
  0xc7   : > { %481 = vmatprep.subr.bf16.mxu0 %v760_v29 }
  0xca   : > { %482 = vmatpush1.bf16.msra.mxu0 %v762_v30 }
  0xcb   : > { %483 = vmatprep.subr.bf16.mxu0 %v763_v31 }
  0xce   : > { %484 = vmatpush1.bf16.msra.mxu0 %v765_v32 }
  0xcf   : > { %485 = vmatprep.subr.bf16.mxu0 %v766_v33 }
  0xd2   : > { %486 = vmatpush1.bf16.msra.mxu0 %v768_v34 }
  0xd3   : > { %487 = vmatprep.subr.bf16.mxu0 %v769_v35 }
  0xd6   : > { %488 = vmatpush1.bf16.msra.mxu0 %v771_v36 }
  0xd7   : > { %489 = vmatprep.subr.bf16.mxu0 %v772_v37 }
  0xda   : > { %490 = vmatpush1.bf16.msra.mxu0 %v774_v38 }
  0xdd   : > { %508 = vmatmul.mubr.bf16.vlgmr.msra.gmra.mrb[0].mxu0 %v378_v40 }
 0x1b0   : > { %v509_v41 = vpop.f32.mrb[0].mxu0 }
 0x1b1   : > { %v516_v42 = vmul.f32 14.285714, %v509_v41  ;;  %v511_v43 = vpop.f32.mrb[1].mxu0 }
 0x1b2   : > { %v517_v44 = vmul.f32 14.285714, %v511_v43  ;;  %v513_v45 = vpop.f32.mrb[2].mxu0 }
 0x1b3   : > { %v514_v46 = vpop.f32.mrb[3].mxu0 }
 0x1b4   : > { %v520_v47 = vcombine.low %v516_v42, %v517_v44 }
 0x1b6   : > { %705 = vst.sshfl [vmem:[%s909_s11] sm:$0x33 pattern:$0x76325410] %v520_v47 }
 0x1b7 PF: > { %s15_s19 = sadd.s32 1, %s813_s19   ;;  %s963_s15 = smov %s801_s16 }
 0x1b8   : > { %p12_p11 = scmp.ge.s32.totalorder %s15_s19, 4   ;;  %s964_s16 = smov %s876_s23 }
 0x1b9   : > { %s965_s17 = smov %s809_s18  ;;  %s966_s18 = smov %s968_s20 }
 0x1ba   :  { %14 = sbr.rel (!%p12_p11) target bundleno = 3 (0x3), region = 127 }

</bundles_post_ra>
